<compile_context>
chip_gen: v5e
topology: v5e:2x2
jax: 0.10.0
libtpu: 0.0.40
codegen_flags: <defaults>
</compile_context>

<pallas_src>
import jax
import jax.numpy as jnp
from jax import lax
from jax.experimental import pallas as pl
from jax.experimental.pallas import tpu as pltpu

# ---- small synthetic BERT config (bert-base scaled down) ----
VOCAB = 100
MAX_POS = 16
HIDDEN = 32
N_HEADS = 4
HEAD_DIM = HIDDEN // N_HEADS
N_LAYERS = 2
FFN = 64
N_OUT = 6          # regressor: Linear(hidden_size, 6)
LN_EPS = 1e-12

# ---- packed vector-parameter slab layout -------------------------------------------
# One (NVEC, 128) f32 slab; every vector occupies one row starting at lane 0, so every
# in-kernel access is a leading-axis (sublane) index + an offset-0 lane slice.
ROW_EMB_G, ROW_EMB_B = 0, 1
OFF_BO = 3 * N_HEADS            # 12 per-head q/k/v bias rows come first in each layer
OFF_LN1G = OFF_BO + 1
OFF_LN1B = OFF_BO + 2
OFF_B1 = OFF_BO + 3
OFF_B2 = OFF_BO + 4
OFF_LN2G = OFF_BO + 5
OFF_LN2B = OFF_BO + 6
ROWS_PER_LAYER = OFF_LN2B + 1   # = 19
ROW_BP = 2 + N_LAYERS * ROWS_PER_LAYER
ROW_BR = ROW_BP + 1
NVEC = ROW_BR + 1


def _layer_base(l):
    return 2 + l * ROWS_PER_LAYER


# ---------------- fused Pallas kernel ----------------

def _ln(x, g, b):
    """LayerNorm over the last axis on an in-VMEM value."""
    mu = jnp.mean(x, axis=-1, keepdims=True)
    var = jnp.mean(jnp.square(x - mu), axis=-1, keepdims=True)
    return (x - mu) * lax.rsqrt(var + LN_EPS) * g + b


def _color_predictor_kernel(
    mask_ref,    # (1, 1, S)   this sequence's attention mask (float)
    x_ref,       # (1, S, H)   word+pos+type embedding sum
    vec_ref,     # (NVEC, 128) packed bias / LayerNorm vectors (lane-dense slab)
    wqkvh_ref,   # (L, 3*nH, H, dh)  per-head Q(pre-scaled)/K/V weights
    wo_ref,      # (L, H, H)
    w1_ref,      # (L, H, FFN)
    w2_ref,      # (L, FFN, H)
    wpr_ref,     # (2, H, H)   [0]=pooler weight, [1]=zero-padded regressor weight
    o_ref,       # (1, 1, N_OUT)
):
    f32 = jnp.float32

    def vrow(r, w=HIDDEN):
        # One packed parameter vector: sublane index r, lane offset 0 -> no relayout.
        return vec_ref[r:r + 1, :w]

    x = x_ref[0]                                                   # (S, H)
    # Additive key-padding bias computed in-kernel from the tiny mask row.
    bias = jnp.where(mask_ref[0] > 0.0, 0.0, -1e9).astype(f32)     # (1, S)

    x = _ln(x, vrow(ROW_EMB_G), vrow(ROW_EMB_B))                   # embedding LayerNorm

    # Encoder layers — static unroll, all weights resident in VMEM.
    for l in range(N_LAYERS):
        base = _layer_base(l)

        # ---- self-attention: per-head Q/K/V via leading-axis-indexed weights ----
        ctx_parts = []
        for h in range(N_HEADS):
            q_h = (jnp.dot(x, wqkvh_ref[l, h], preferred_element_type=f32)
                   + vrow(base + h, HEAD_DIM))                     # 1/sqrt(dh) pre-folded
            k_h = (jnp.dot(x, wqkvh_ref[l, N_HEADS + h], preferred_element_type=f32)
                   + vrow(base + N_HEADS + h, HEAD_DIM))
            v_h = (jnp.dot(x, wqkvh_ref[l, 2 * N_HEADS + h], preferred_element_type=f32)
                   + vrow(base + 2 * N_HEADS + h, HEAD_DIM))

            # Scores contracting on head_dim (no explicit k transpose), masked keys.
            s = lax.dot_general(q_h, k_h, (((1,), (1,)), ((), ())),
                                preferred_element_type=f32) + bias
            s = s - jnp.max(s, axis=-1, keepdims=True)
            e = jnp.exp(s)
            p = e * pl.reciprocal(jnp.sum(e, axis=-1, keepdims=True), approx=True)
            ctx_parts.append(jnp.dot(p, v_h, preferred_element_type=f32))   # (S, dh)

        # Single output projection: assemble ctx once, one (S,H)@(H,H) matmul.
        ctx = jnp.concatenate(ctx_parts, axis=-1)                  # (S, H)
        attn = jnp.dot(ctx, wo_ref[l], preferred_element_type=f32) + vrow(base + OFF_BO)
        x = _ln(x + attn, vrow(base + OFF_LN1G), vrow(base + OFF_LN1B))

        # ---- feed-forward ----
        ff = jnp.dot(x, w1_ref[l], preferred_element_type=f32) + vrow(base + OFF_B1, FFN)
        # TODO(synk): HF BERT uses exact erf-GELU; tanh approximation used here.
        ff = jax.nn.gelu(ff, approximate=True)
        ff = jnp.dot(ff, w2_ref[l], preferred_element_type=f32) + vrow(base + OFF_B2)
        x = _ln(x + ff, vrow(base + OFF_LN2G), vrow(base + OFF_LN2B))

    # ---- pooler (tanh on the CLS row) + regressor, fused ----
    cls = x[0:1, :]                                                # (1, H), CLS = row 0
    pooled = jnp.tanh(jnp.dot(cls, wpr_ref[0], preferred_element_type=f32)
                      + vrow(ROW_BP))
    out = (jnp.dot(pooled, wpr_ref[1], preferred_element_type=f32)[:, :N_OUT]
           + vrow(ROW_BR, N_OUT))
    o_ref[0] = out.astype(o_ref.dtype)


# ---------------- parameters ----------------

def init_params(key):
    """Natural (BERT-state-dict-like) parameter layout."""
    keys = iter(jax.random.split(key, 32))

    def nrm(shape):
        return 0.02 * jax.random.normal(next(keys), shape, dtype=jnp.float32)

    L, H = N_LAYERS, HIDDEN
    return {
        "word_emb": nrm((VOCAB, H)),
        "pos_emb": nrm((MAX_POS, H)),
        "type_emb": nrm((2, H)),
        "emb_ln_g": jnp.ones((H,), jnp.float32),
        "emb_ln_b": jnp.zeros((H,), jnp.float32),
        "wq": nrm((L, H, H)), "bq": jnp.zeros((L, H), jnp.float32),
        "wk": nrm((L, H, H)), "bk": jnp.zeros((L, H), jnp.float32),
        "wv": nrm((L, H, H)), "bv": jnp.zeros((L, H), jnp.float32),
        "wo": nrm((L, H, H)), "bo": jnp.zeros((L, H), jnp.float32),
        "ln1_g": jnp.ones((L, H), jnp.float32), "ln1_b": jnp.zeros((L, H), jnp.float32),
        "w1": nrm((L, H, FFN)), "b1": jnp.zeros((L, FFN), jnp.float32),
        "w2": nrm((L, FFN, H)), "b2": jnp.zeros((L, H), jnp.float32),
        "ln2_g": jnp.ones((L, H), jnp.float32), "ln2_b": jnp.zeros((L, H), jnp.float32),
        "wp": nrm((H, H)), "bp": jnp.zeros((H,), jnp.float32),
        "wr": nrm((H, N_OUT)), "br": jnp.zeros((N_OUT,), jnp.float32),
    }


def pack_params(p):
    """One-time wrapper-side repack: per-head weights, scale folding, lane-dense slab."""
    scale = 1.0 / (HEAD_DIM ** 0.5)

    def per_head(w):  # (H, H) -> (nH, H, dh): head index on a leading axis
        return w.reshape(HIDDEN, N_HEADS, HEAD_DIM).transpose(1, 0, 2)

    wqkvh = jnp.stack([
        jnp.concatenate([per_head(p["wq"][l] * scale),      # fold 1/sqrt(dh) into Q
                         per_head(p["wk"][l]),
                         per_head(p["wv"][l])], axis=0)
        for l in range(N_LAYERS)], axis=0)                   # (L, 3*nH, H, dh)

    # Lane-dense slab of every bias / LayerNorm vector (one row each, lane offset 0).
    rows = [(ROW_EMB_G, p["emb_ln_g"]), (ROW_EMB_B, p["emb_ln_b"])]
    for l in range(N_LAYERS):
        base = _layer_base(l)
        bq = (p["bq"][l] * scale).reshape(N_HEADS, HEAD_DIM)
        bk = p["bk"][l].reshape(N_HEADS, HEAD_DIM)
        bv = p["bv"][l].reshape(N_HEADS, HEAD_DIM)
        for h in range(N_HEADS):
            rows += [(base + h, bq[h]),
                     (base + N_HEADS + h, bk[h]),
                     (base + 2 * N_HEADS + h, bv[h])]
        rows += [(base + OFF_BO, p["bo"][l]),
                 (base + OFF_LN1G, p["ln1_g"][l]), (base + OFF_LN1B, p["ln1_b"][l]),
                 (base + OFF_B1, p["b1"][l]), (base + OFF_B2, p["b2"][l]),
                 (base + OFF_LN2G, p["ln2_g"][l]), (base + OFF_LN2B, p["ln2_b"][l])]
    rows += [(ROW_BP, p["bp"]), (ROW_BR, p["br"])]

    vec = jnp.zeros((NVEC, 128), jnp.float32)
    for r, v in rows:
        vec = vec.at[r, :v.shape[0]].set(v.astype(jnp.float32))

    # Pooler weight and zero-padded regressor weight stacked on a leading axis.
    wr_pad = jnp.zeros((HIDDEN, HIDDEN), jnp.float32).at[:, :N_OUT].set(p["wr"])
    wpr = jnp.stack([p["wp"], wr_pad], axis=0)               # (2, H, H)

    return {
        "word_emb": p["word_emb"], "pos_emb": p["pos_emb"], "type_emb": p["type_emb"],
        "vec": vec, "wqkvh": wqkvh, "wo": p["wo"], "w1": p["w1"], "w2": p["w2"],
        "wpr": wpr,
    }


# ---------------- forward pass ----------------

def color_predictor_forward(packed, input_ids, attention_mask):
    B, S = input_ids.shape

    # Embedding gathers are glue, kept in plain JAX.
    x = (packed["word_emb"][input_ids]
         + packed["pos_emb"][:S][None, :, :]
         + packed["type_emb"][0][None, None, :]).astype(jnp.float32)     # (B, S, H)
    mask = attention_mask.astype(jnp.float32).reshape(B, 1, S)

    args = (mask, x, packed["vec"], packed["wqkvh"], packed["wo"],
            packed["w1"], packed["w2"], packed["wpr"])

    in_specs = [
        pl.BlockSpec((1, 1, S), lambda b: (b, 0, 0)),               # mask row
        pl.BlockSpec((1, S, HIDDEN), lambda b: (b, 0, 0)),          # embeddings
        pl.BlockSpec(packed["vec"].shape, lambda b: (0, 0)),        # weights below are
        pl.BlockSpec(packed["wqkvh"].shape, lambda b: (0, 0, 0, 0)),  # DMA'd once (const
        pl.BlockSpec(packed["wo"].shape, lambda b: (0, 0, 0)),        # block index)
        pl.BlockSpec(packed["w1"].shape, lambda b: (0, 0, 0)),
        pl.BlockSpec(packed["w2"].shape, lambda b: (0, 0, 0)),
        pl.BlockSpec(packed["wpr"].shape, lambda b: (0, 0, 0)),
    ]

    out = pl.pallas_call(
        _color_predictor_kernel,
        out_shape=jax.ShapeDtypeStruct((B, 1, N_OUT), jnp.float32),
        grid=(B,),
        in_specs=in_specs,
        out_specs=pl.BlockSpec((1, 1, N_OUT), lambda b: (b, 0, 0)),
        compiler_params=pltpu.CompilerParams(dimension_semantics=("parallel",)),
    )(*args)
    return out.reshape(B, N_OUT)


if __name__ == "__main__":
    key = jax.random.PRNGKey(0)
    k_param, k_ids = jax.random.split(key)

    params = init_params(k_param)
    packed = pack_params(params)     # one-time repack / scale fold outside the hot path

    B, S = 2, 8
    input_ids = jax.random.randint(k_ids, (B, S), 0, VOCAB, dtype=jnp.int32)
    attention_mask = jnp.array(
        [[1, 1, 1, 1, 1, 1, 1, 1],
         [1, 1, 1, 1, 1, 0, 0, 0]], dtype=jnp.int32)

    fwd = jax.jit(color_predictor_forward)
    out = fwd(packed, input_ids, attention_mask)
    out = jax.block_until_ready(out)
    assert out.shape == (B, N_OUT) and out.dtype == jnp.float32
    print("KERNEL_OK")
</pallas_src>

<mosaic_0001>
module attributes {stable_mosaic.version = 11 : i64} {
  func.func @_color_predictor_kernel(%arg0: i32, %arg1: memref<1x1x8xf32, #tpu.memory_space<vmem>>, %arg2: memref<1x8x32xf32, #tpu.memory_space<vmem>>, %arg3: memref<42x128xf32, #tpu.memory_space<vmem>>, %arg4: memref<2x12x32x8xf32, #tpu.memory_space<vmem>>, %arg5: memref<2x32x32xf32, #tpu.memory_space<vmem>>, %arg6: memref<2x32x64xf32, #tpu.memory_space<vmem>>, %arg7: memref<2x64x32xf32, #tpu.memory_space<vmem>>, %arg8: memref<2x32x32xf32, #tpu.memory_space<vmem>>, %arg9: memref<1x1x6xf32, #tpu.memory_space<vmem>>) attributes {dimension_semantics = [#tpu.dimension_semantics<parallel>], iteration_bounds = array<i64: 2>, scalar_prefetch = 0 : i64, scratch_operands = 0 : i64, tpu.core_type = #tpu.core_type<tc>, window_params = [{transform_indices = @transform_0, window_bounds = array<i64: 1, 1, 8>}, {transform_indices = @transform_1, window_bounds = array<i64: 1, 8, 32>}, {pipeline_mode = #tpu.pipeline_mode<synchronous>, transform_indices = @transform_2, window_bounds = array<i64: 42, 128>}, {pipeline_mode = #tpu.pipeline_mode<synchronous>, transform_indices = @transform_3, window_bounds = array<i64: 2, 12, 32, 8>}, {pipeline_mode = #tpu.pipeline_mode<synchronous>, transform_indices = @transform_4, window_bounds = array<i64: 2, 32, 32>}, {pipeline_mode = #tpu.pipeline_mode<synchronous>, transform_indices = @transform_5, window_bounds = array<i64: 2, 32, 64>}, {pipeline_mode = #tpu.pipeline_mode<synchronous>, transform_indices = @transform_6, window_bounds = array<i64: 2, 64, 32>}, {pipeline_mode = #tpu.pipeline_mode<synchronous>, transform_indices = @transform_7, window_bounds = array<i64: 2, 32, 32>}, {transform_indices = @transform_8, window_bounds = array<i64: 1, 1, 6>}]} {
    %c0 = arith.constant 0 : index
    %c0_0 = arith.constant 0 : index
    %c0_1 = arith.constant 0 : index
    %0 = vector.load %arg2[%c0, %c0_0, %c0_1] : memref<1x8x32xf32, #tpu.memory_space<vmem>>, vector<1x8x32xf32>
    %1 = vector.shape_cast %0 : vector<1x8x32xf32> to vector<8x32xf32>
    %c0_2 = arith.constant 0 : index
    %c0_3 = arith.constant 0 : index
    %c0_4 = arith.constant 0 : index
    %2 = vector.load %arg1[%c0_2, %c0_3, %c0_4] : memref<1x1x8xf32, #tpu.memory_space<vmem>>, vector<1x1x8xf32>
    %3 = vector.shape_cast %2 : vector<1x1x8xf32> to vector<1x8xf32>
    %cst = arith.constant 0.000000e+00 : f32
    %4 = vector.broadcast %cst : f32 to vector<1x8xf32>
    %5 = arith.cmpf ogt, %3, %4 : vector<1x8xf32>
    %cst_5 = arith.constant 0.000000e+00 : f32
    %cst_6 = arith.constant -1.000000e+09 : f32
    %6 = vector.broadcast %cst_5 : f32 to vector<1x8xf32>
    %7 = vector.broadcast %cst_6 : f32 to vector<1x8xf32>
    %8 = arith.select %5, %6, %7 : vector<1x8xi1>, vector<1x8xf32>
    %c0_7 = arith.constant 0 : index
    %c0_8 = arith.constant 0 : index
    %9 = vector.load %arg3[%c0_7, %c0_8] : memref<42x128xf32, #tpu.memory_space<vmem>>, vector<1x32xf32>
    %c1 = arith.constant 1 : index
    %c0_9 = arith.constant 0 : index
    %10 = vector.load %arg3[%c1, %c0_9] : memref<42x128xf32, #tpu.memory_space<vmem>>, vector<1x32xf32>
    %cst_10 = arith.constant dense<0.000000e+00> : vector<8xf32>
    %11 = vector.multi_reduction <add>, %1, %cst_10 [1] : vector<8x32xf32> to vector<8xf32>
    %12 = vector.shape_cast %11 : vector<8xf32> to vector<8x1xf32>
    %cst_11 = arith.constant 3.200000e+01 : f32
    %13 = vector.broadcast %cst_11 : f32 to vector<8x1xf32>
    %14 = arith.divf %12, %13 : vector<8x1xf32>
    %15 = vector.broadcast %14 : vector<8x1xf32> to vector<8x32xf32>
    %16 = arith.subf %1, %15 : vector<8x32xf32>
    %17 = arith.mulf %16, %16 : vector<8x32xf32>
    %cst_12 = arith.constant dense<0.000000e+00> : vector<8xf32>
    %18 = vector.multi_reduction <add>, %17, %cst_12 [1] : vector<8x32xf32> to vector<8xf32>
    %19 = vector.shape_cast %18 : vector<8xf32> to vector<8x1xf32>
    %cst_13 = arith.constant 3.200000e+01 : f32
    %20 = vector.broadcast %cst_13 : f32 to vector<8x1xf32>
    %21 = arith.divf %19, %20 : vector<8x1xf32>
    %22 = vector.broadcast %14 : vector<8x1xf32> to vector<8x32xf32>
    %23 = arith.subf %1, %22 : vector<8x32xf32>
    %cst_14 = arith.constant 9.99999996E-13 : f32
    %24 = vector.broadcast %cst_14 : f32 to vector<8x1xf32>
    %25 = arith.addf %21, %24 : vector<8x1xf32>
    %26 = math.rsqrt %25 : vector<8x1xf32>
    %27 = vector.broadcast %26 : vector<8x1xf32> to vector<8x32xf32>
    %28 = arith.mulf %23, %27 : vector<8x32xf32>
    %29 = vector.broadcast %9 : vector<1x32xf32> to vector<8x32xf32>
    %30 = arith.mulf %28, %29 : vector<8x32xf32>
    %31 = vector.broadcast %10 : vector<1x32xf32> to vector<8x32xf32>
    %32 = arith.addf %30, %31 : vector<8x32xf32>
    %c0_15 = arith.constant 0 : index
    %c0_16 = arith.constant 0 : index
    %c0_17 = arith.constant 0 : index
    %c0_18 = arith.constant 0 : index
    %33 = vector.load %arg4[%c0_15, %c0_16, %c0_17, %c0_18] : memref<2x12x32x8xf32, #tpu.memory_space<vmem>>, vector<1x1x32x8xf32>
    %34 = vector.shape_cast %33 : vector<1x1x32x8xf32> to vector<32x8xf32>
    %cst_19 = arith.constant dense<0.000000e+00> : vector<8x8xf32>
    %35 = tpu.matmul %32, %34, %cst_19 {dimension_numbers = #tpu.dot_dimension_numbers<[1], [0], [0], [1], [0, 0, 1, 1], [], []>} : vector<8x32xf32>, vector<32x8xf32>, vector<8x8xf32> -> vector<8x8xf32>
    %c2 = arith.constant 2 : index
    %c0_20 = arith.constant 0 : index
    %36 = vector.load %arg3[%c2, %c0_20] : memref<42x128xf32, #tpu.memory_space<vmem>>, vector<1x8xf32>
    %37 = vector.broadcast %36 : vector<1x8xf32> to vector<8x8xf32>
    %38 = arith.addf %35, %37 : vector<8x8xf32>
    %c0_21 = arith.constant 0 : index
    %c4 = arith.constant 4 : index
    %c0_22 = arith.constant 0 : index
    %c0_23 = arith.constant 0 : index
    %39 = vector.load %arg4[%c0_21, %c4, %c0_22, %c0_23] : memref<2x12x32x8xf32, #tpu.memory_space<vmem>>, vector<1x1x32x8xf32>
    %40 = vector.shape_cast %39 : vector<1x1x32x8xf32> to vector<32x8xf32>
    %cst_24 = arith.constant dense<0.000000e+00> : vector<8x8xf32>
    %41 = tpu.matmul %32, %40, %cst_24 {dimension_numbers = #tpu.dot_dimension_numbers<[1], [0], [0], [1], [0, 0, 1, 1], [], []>} : vector<8x32xf32>, vector<32x8xf32>, vector<8x8xf32> -> vector<8x8xf32>
    %c6 = arith.constant 6 : index
    %c0_25 = arith.constant 0 : index
    %42 = vector.load %arg3[%c6, %c0_25] : memref<42x128xf32, #tpu.memory_space<vmem>>, vector<1x8xf32>
    %43 = vector.broadcast %42 : vector<1x8xf32> to vector<8x8xf32>
    %44 = arith.addf %41, %43 : vector<8x8xf32>
    %c0_26 = arith.constant 0 : index
    %c8 = arith.constant 8 : index
    %c0_27 = arith.constant 0 : index
    %c0_28 = arith.constant 0 : index
    %45 = vector.load %arg4[%c0_26, %c8, %c0_27, %c0_28] : memref<2x12x32x8xf32, #tpu.memory_space<vmem>>, vector<1x1x32x8xf32>
    %46 = vector.shape_cast %45 : vector<1x1x32x8xf32> to vector<32x8xf32>
    %cst_29 = arith.constant dense<0.000000e+00> : vector<8x8xf32>
    %47 = tpu.matmul %32, %46, %cst_29 {dimension_numbers = #tpu.dot_dimension_numbers<[1], [0], [0], [1], [0, 0, 1, 1], [], []>} : vector<8x32xf32>, vector<32x8xf32>, vector<8x8xf32> -> vector<8x8xf32>
    %c10 = arith.constant 10 : index
    %c0_30 = arith.constant 0 : index
    %48 = vector.load %arg3[%c10, %c0_30] : memref<42x128xf32, #tpu.memory_space<vmem>>, vector<1x8xf32>
    %49 = vector.broadcast %48 : vector<1x8xf32> to vector<8x8xf32>
    %50 = arith.addf %47, %49 : vector<8x8xf32>
    %cst_31 = arith.constant dense<0.000000e+00> : vector<8x8xf32>
    %51 = tpu.matmul %38, %44, %cst_31 {dimension_numbers = #tpu.dot_dimension_numbers<[1], [1], [0], [0], [0, 0, 1, 0], [], []>} : vector<8x8xf32>, vector<8x8xf32>, vector<8x8xf32> -> vector<8x8xf32>
    %52 = vector.broadcast %8 : vector<1x8xf32> to vector<8x8xf32>
    %53 = arith.addf %51, %52 : vector<8x8xf32>
    %cst_32 = arith.constant dense<0xFF800000> : vector<8xf32>
    %54 = vector.multi_reduction <maximumf>, %53, %cst_32 [1] : vector<8x8xf32> to vector<8xf32>
    %55 = vector.shape_cast %54 : vector<8xf32> to vector<8x1xf32>
    %56 = vector.broadcast %55 : vector<8x1xf32> to vector<8x8xf32>
    %57 = arith.subf %53, %56 : vector<8x8xf32>
    %58 = math.exp %57 : vector<8x8xf32>
    %cst_33 = arith.constant dense<0.000000e+00> : vector<8xf32>
    %59 = vector.multi_reduction <add>, %58, %cst_33 [1] : vector<8x8xf32> to vector<8xf32>
    %60 = vector.shape_cast %59 : vector<8xf32> to vector<8x1xf32>
    %61 = tpu.reciprocal %60 {approx = true} : vector<8x1xf32> -> vector<8x1xf32>
    %62 = vector.broadcast %61 : vector<8x1xf32> to vector<8x8xf32>
    %63 = arith.mulf %58, %62 : vector<8x8xf32>
    %cst_34 = arith.constant dense<0.000000e+00> : vector<8x8xf32>
    %64 = tpu.matmul %63, %50, %cst_34 {dimension_numbers = #tpu.dot_dimension_numbers<[1], [0], [0], [1], [0, 0, 1, 1], [], []>} : vector<8x8xf32>, vector<8x8xf32>, vector<8x8xf32> -> vector<8x8xf32>
    %c0_35 = arith.constant 0 : index
    %c1_36 = arith.constant 1 : index
    %c0_37 = arith.constant 0 : index
    %c0_38 = arith.constant 0 : index
    %65 = vector.load %arg4[%c0_35, %c1_36, %c0_37, %c0_38] : memref<2x12x32x8xf32, #tpu.memory_space<vmem>>, vector<1x1x32x8xf32>
    %66 = vector.shape_cast %65 : vector<1x1x32x8xf32> to vector<32x8xf32>
    %cst_39 = arith.constant dense<0.000000e+00> : vector<8x8xf32>
    %67 = tpu.matmul %32, %66, %cst_39 {dimension_numbers = #tpu.dot_dimension_numbers<[1], [0], [0], [1], [0, 0, 1, 1], [], []>} : vector<8x32xf32>, vector<32x8xf32>, vector<8x8xf32> -> vector<8x8xf32>
    %c3 = arith.constant 3 : index
    %c0_40 = arith.constant 0 : index
    %68 = vector.load %arg3[%c3, %c0_40] : memref<42x128xf32, #tpu.memory_space<vmem>>, vector<1x8xf32>
    %69 = vector.broadcast %68 : vector<1x8xf32> to vector<8x8xf32>
    %70 = arith.addf %67, %69 : vector<8x8xf32>
    %c0_41 = arith.constant 0 : index
    %c5 = arith.constant 5 : index
    %c0_42 = arith.constant 0 : index
    %c0_43 = arith.constant 0 : index
    %71 = vector.load %arg4[%c0_41, %c5, %c0_42, %c0_43] : memref<2x12x32x8xf32, #tpu.memory_space<vmem>>, vector<1x1x32x8xf32>
    %72 = vector.shape_cast %71 : vector<1x1x32x8xf32> to vector<32x8xf32>
    %cst_44 = arith.constant dense<0.000000e+00> : vector<8x8xf32>
    %73 = tpu.matmul %32, %72, %cst_44 {dimension_numbers = #tpu.dot_dimension_numbers<[1], [0], [0], [1], [0, 0, 1, 1], [], []>} : vector<8x32xf32>, vector<32x8xf32>, vector<8x8xf32> -> vector<8x8xf32>
    %c7 = arith.constant 7 : index
    %c0_45 = arith.constant 0 : index
    %74 = vector.load %arg3[%c7, %c0_45] : memref<42x128xf32, #tpu.memory_space<vmem>>, vector<1x8xf32>
    %75 = vector.broadcast %74 : vector<1x8xf32> to vector<8x8xf32>
    %76 = arith.addf %73, %75 : vector<8x8xf32>
    %c0_46 = arith.constant 0 : index
    %c9 = arith.constant 9 : index
    %c0_47 = arith.constant 0 : index
    %c0_48 = arith.constant 0 : index
    %77 = vector.load %arg4[%c0_46, %c9, %c0_47, %c0_48] : memref<2x12x32x8xf32, #tpu.memory_space<vmem>>, vector<1x1x32x8xf32>
    %78 = vector.shape_cast %77 : vector<1x1x32x8xf32> to vector<32x8xf32>
    %cst_49 = arith.constant dense<0.000000e+00> : vector<8x8xf32>
    %79 = tpu.matmul %32, %78, %cst_49 {dimension_numbers = #tpu.dot_dimension_numbers<[1], [0], [0], [1], [0, 0, 1, 1], [], []>} : vector<8x32xf32>, vector<32x8xf32>, vector<8x8xf32> -> vector<8x8xf32>
    %c11 = arith.constant 11 : index
    %c0_50 = arith.constant 0 : index
    %80 = vector.load %arg3[%c11, %c0_50] : memref<42x128xf32, #tpu.memory_space<vmem>>, vector<1x8xf32>
    %81 = vector.broadcast %80 : vector<1x8xf32> to vector<8x8xf32>
    %82 = arith.addf %79, %81 : vector<8x8xf32>
    %cst_51 = arith.constant dense<0.000000e+00> : vector<8x8xf32>
    %83 = tpu.matmul %70, %76, %cst_51 {dimension_numbers = #tpu.dot_dimension_numbers<[1], [1], [0], [0], [0, 0, 1, 0], [], []>} : vector<8x8xf32>, vector<8x8xf32>, vector<8x8xf32> -> vector<8x8xf32>
    %84 = vector.broadcast %8 : vector<1x8xf32> to vector<8x8xf32>
    %85 = arith.addf %83, %84 : vector<8x8xf32>
    %cst_52 = arith.constant dense<0xFF800000> : vector<8xf32>
    %86 = vector.multi_reduction <maximumf>, %85, %cst_52 [1] : vector<8x8xf32> to vector<8xf32>
    %87 = vector.shape_cast %86 : vector<8xf32> to vector<8x1xf32>
    %88 = vector.broadcast %87 : vector<8x1xf32> to vector<8x8xf32>
    %89 = arith.subf %85, %88 : vector<8x8xf32>
    %90 = math.exp %89 : vector<8x8xf32>
    %cst_53 = arith.constant dense<0.000000e+00> : vector<8xf32>
    %91 = vector.multi_reduction <add>, %90, %cst_53 [1] : vector<8x8xf32> to vector<8xf32>
    %92 = vector.shape_cast %91 : vector<8xf32> to vector<8x1xf32>
    %93 = tpu.reciprocal %92 {approx = true} : vector<8x1xf32> -> vector<8x1xf32>
    %94 = vector.broadcast %93 : vector<8x1xf32> to vector<8x8xf32>
    %95 = arith.mulf %90, %94 : vector<8x8xf32>
    %cst_54 = arith.constant dense<0.000000e+00> : vector<8x8xf32>
    %96 = tpu.matmul %95, %82, %cst_54 {dimension_numbers = #tpu.dot_dimension_numbers<[1], [0], [0], [1], [0, 0, 1, 1], [], []>} : vector<8x8xf32>, vector<8x8xf32>, vector<8x8xf32> -> vector<8x8xf32>
    %c0_55 = arith.constant 0 : index
    %c2_56 = arith.constant 2 : index
    %c0_57 = arith.constant 0 : index
    %c0_58 = arith.constant 0 : index
    %97 = vector.load %arg4[%c0_55, %c2_56, %c0_57, %c0_58] : memref<2x12x32x8xf32, #tpu.memory_space<vmem>>, vector<1x1x32x8xf32>
    %98 = vector.shape_cast %97 : vector<1x1x32x8xf32> to vector<32x8xf32>
    %cst_59 = arith.constant dense<0.000000e+00> : vector<8x8xf32>
    %99 = tpu.matmul %32, %98, %cst_59 {dimension_numbers = #tpu.dot_dimension_numbers<[1], [0], [0], [1], [0, 0, 1, 1], [], []>} : vector<8x32xf32>, vector<32x8xf32>, vector<8x8xf32> -> vector<8x8xf32>
    %c4_60 = arith.constant 4 : index
    %c0_61 = arith.constant 0 : index
    %100 = vector.load %arg3[%c4_60, %c0_61] : memref<42x128xf32, #tpu.memory_space<vmem>>, vector<1x8xf32>
    %101 = vector.broadcast %100 : vector<1x8xf32> to vector<8x8xf32>
    %102 = arith.addf %99, %101 : vector<8x8xf32>
    %c0_62 = arith.constant 0 : index
    %c6_63 = arith.constant 6 : index
    %c0_64 = arith.constant 0 : index
    %c0_65 = arith.constant 0 : index
    %103 = vector.load %arg4[%c0_62, %c6_63, %c0_64, %c0_65] : memref<2x12x32x8xf32, #tpu.memory_space<vmem>>, vector<1x1x32x8xf32>
    %104 = vector.shape_cast %103 : vector<1x1x32x8xf32> to vector<32x8xf32>
    %cst_66 = arith.constant dense<0.000000e+00> : vector<8x8xf32>
    %105 = tpu.matmul %32, %104, %cst_66 {dimension_numbers = #tpu.dot_dimension_numbers<[1], [0], [0], [1], [0, 0, 1, 1], [], []>} : vector<8x32xf32>, vector<32x8xf32>, vector<8x8xf32> -> vector<8x8xf32>
    %c8_67 = arith.constant 8 : index
    %c0_68 = arith.constant 0 : index
    %106 = vector.load %arg3[%c8_67, %c0_68] : memref<42x128xf32, #tpu.memory_space<vmem>>, vector<1x8xf32>
    %107 = vector.broadcast %106 : vector<1x8xf32> to vector<8x8xf32>
    %108 = arith.addf %105, %107 : vector<8x8xf32>
    %c0_69 = arith.constant 0 : index
    %c10_70 = arith.constant 10 : index
    %c0_71 = arith.constant 0 : index
    %c0_72 = arith.constant 0 : index
    %109 = vector.load %arg4[%c0_69, %c10_70, %c0_71, %c0_72] : memref<2x12x32x8xf32, #tpu.memory_space<vmem>>, vector<1x1x32x8xf32>
    %110 = vector.shape_cast %109 : vector<1x1x32x8xf32> to vector<32x8xf32>
    %cst_73 = arith.constant dense<0.000000e+00> : vector<8x8xf32>
    %111 = tpu.matmul %32, %110, %cst_73 {dimension_numbers = #tpu.dot_dimension_numbers<[1], [0], [0], [1], [0, 0, 1, 1], [], []>} : vector<8x32xf32>, vector<32x8xf32>, vector<8x8xf32> -> vector<8x8xf32>
    %c12 = arith.constant 12 : index
    %c0_74 = arith.constant 0 : index
    %112 = vector.load %arg3[%c12, %c0_74] : memref<42x128xf32, #tpu.memory_space<vmem>>, vector<1x8xf32>
    %113 = vector.broadcast %112 : vector<1x8xf32> to vector<8x8xf32>
    %114 = arith.addf %111, %113 : vector<8x8xf32>
    %cst_75 = arith.constant dense<0.000000e+00> : vector<8x8xf32>
    %115 = tpu.matmul %102, %108, %cst_75 {dimension_numbers = #tpu.dot_dimension_numbers<[1], [1], [0], [0], [0, 0, 1, 0], [], []>} : vector<8x8xf32>, vector<8x8xf32>, vector<8x8xf32> -> vector<8x8xf32>
    %116 = vector.broadcast %8 : vector<1x8xf32> to vector<8x8xf32>
    %117 = arith.addf %115, %116 : vector<8x8xf32>
    %cst_76 = arith.constant dense<0xFF800000> : vector<8xf32>
    %118 = vector.multi_reduction <maximumf>, %117, %cst_76 [1] : vector<8x8xf32> to vector<8xf32>
    %119 = vector.shape_cast %118 : vector<8xf32> to vector<8x1xf32>
    %120 = vector.broadcast %119 : vector<8x1xf32> to vector<8x8xf32>
    %121 = arith.subf %117, %120 : vector<8x8xf32>
    %122 = math.exp %121 : vector<8x8xf32>
    %cst_77 = arith.constant dense<0.000000e+00> : vector<8xf32>
    %123 = vector.multi_reduction <add>, %122, %cst_77 [1] : vector<8x8xf32> to vector<8xf32>
    %124 = vector.shape_cast %123 : vector<8xf32> to vector<8x1xf32>
    %125 = tpu.reciprocal %124 {approx = true} : vector<8x1xf32> -> vector<8x1xf32>
    %126 = vector.broadcast %125 : vector<8x1xf32> to vector<8x8xf32>
    %127 = arith.mulf %122, %126 : vector<8x8xf32>
    %cst_78 = arith.constant dense<0.000000e+00> : vector<8x8xf32>
    %128 = tpu.matmul %127, %114, %cst_78 {dimension_numbers = #tpu.dot_dimension_numbers<[1], [0], [0], [1], [0, 0, 1, 1], [], []>} : vector<8x8xf32>, vector<8x8xf32>, vector<8x8xf32> -> vector<8x8xf32>
    %c0_79 = arith.constant 0 : index
    %c3_80 = arith.constant 3 : index
    %c0_81 = arith.constant 0 : index
    %c0_82 = arith.constant 0 : index
    %129 = vector.load %arg4[%c0_79, %c3_80, %c0_81, %c0_82] : memref<2x12x32x8xf32, #tpu.memory_space<vmem>>, vector<1x1x32x8xf32>
    %130 = vector.shape_cast %129 : vector<1x1x32x8xf32> to vector<32x8xf32>
    %cst_83 = arith.constant dense<0.000000e+00> : vector<8x8xf32>
    %131 = tpu.matmul %32, %130, %cst_83 {dimension_numbers = #tpu.dot_dimension_numbers<[1], [0], [0], [1], [0, 0, 1, 1], [], []>} : vector<8x32xf32>, vector<32x8xf32>, vector<8x8xf32> -> vector<8x8xf32>
    %c5_84 = arith.constant 5 : index
    %c0_85 = arith.constant 0 : index
    %132 = vector.load %arg3[%c5_84, %c0_85] : memref<42x128xf32, #tpu.memory_space<vmem>>, vector<1x8xf32>
    %133 = vector.broadcast %132 : vector<1x8xf32> to vector<8x8xf32>
    %134 = arith.addf %131, %133 : vector<8x8xf32>
    %c0_86 = arith.constant 0 : index
    %c7_87 = arith.constant 7 : index
    %c0_88 = arith.constant 0 : index
    %c0_89 = arith.constant 0 : index
    %135 = vector.load %arg4[%c0_86, %c7_87, %c0_88, %c0_89] : memref<2x12x32x8xf32, #tpu.memory_space<vmem>>, vector<1x1x32x8xf32>
    %136 = vector.shape_cast %135 : vector<1x1x32x8xf32> to vector<32x8xf32>
    %cst_90 = arith.constant dense<0.000000e+00> : vector<8x8xf32>
    %137 = tpu.matmul %32, %136, %cst_90 {dimension_numbers = #tpu.dot_dimension_numbers<[1], [0], [0], [1], [0, 0, 1, 1], [], []>} : vector<8x32xf32>, vector<32x8xf32>, vector<8x8xf32> -> vector<8x8xf32>
    %c9_91 = arith.constant 9 : index
    %c0_92 = arith.constant 0 : index
    %138 = vector.load %arg3[%c9_91, %c0_92] : memref<42x128xf32, #tpu.memory_space<vmem>>, vector<1x8xf32>
    %139 = vector.broadcast %138 : vector<1x8xf32> to vector<8x8xf32>
    %140 = arith.addf %137, %139 : vector<8x8xf32>
    %c0_93 = arith.constant 0 : index
    %c11_94 = arith.constant 11 : index
    %c0_95 = arith.constant 0 : index
    %c0_96 = arith.constant 0 : index
    %141 = vector.load %arg4[%c0_93, %c11_94, %c0_95, %c0_96] : memref<2x12x32x8xf32, #tpu.memory_space<vmem>>, vector<1x1x32x8xf32>
    %142 = vector.shape_cast %141 : vector<1x1x32x8xf32> to vector<32x8xf32>
    %cst_97 = arith.constant dense<0.000000e+00> : vector<8x8xf32>
    %143 = tpu.matmul %32, %142, %cst_97 {dimension_numbers = #tpu.dot_dimension_numbers<[1], [0], [0], [1], [0, 0, 1, 1], [], []>} : vector<8x32xf32>, vector<32x8xf32>, vector<8x8xf32> -> vector<8x8xf32>
    %c13 = arith.constant 13 : index
    %c0_98 = arith.constant 0 : index
    %144 = vector.load %arg3[%c13, %c0_98] : memref<42x128xf32, #tpu.memory_space<vmem>>, vector<1x8xf32>
    %145 = vector.broadcast %144 : vector<1x8xf32> to vector<8x8xf32>
    %146 = arith.addf %143, %145 : vector<8x8xf32>
    %cst_99 = arith.constant dense<0.000000e+00> : vector<8x8xf32>
    %147 = tpu.matmul %134, %140, %cst_99 {dimension_numbers = #tpu.dot_dimension_numbers<[1], [1], [0], [0], [0, 0, 1, 0], [], []>} : vector<8x8xf32>, vector<8x8xf32>, vector<8x8xf32> -> vector<8x8xf32>
    %148 = vector.broadcast %8 : vector<1x8xf32> to vector<8x8xf32>
    %149 = arith.addf %147, %148 : vector<8x8xf32>
    %cst_100 = arith.constant dense<0xFF800000> : vector<8xf32>
    %150 = vector.multi_reduction <maximumf>, %149, %cst_100 [1] : vector<8x8xf32> to vector<8xf32>
    %151 = vector.shape_cast %150 : vector<8xf32> to vector<8x1xf32>
    %152 = vector.broadcast %151 : vector<8x1xf32> to vector<8x8xf32>
    %153 = arith.subf %149, %152 : vector<8x8xf32>
    %154 = math.exp %153 : vector<8x8xf32>
    %cst_101 = arith.constant dense<0.000000e+00> : vector<8xf32>
    %155 = vector.multi_reduction <add>, %154, %cst_101 [1] : vector<8x8xf32> to vector<8xf32>
    %156 = vector.shape_cast %155 : vector<8xf32> to vector<8x1xf32>
    %157 = tpu.reciprocal %156 {approx = true} : vector<8x1xf32> -> vector<8x1xf32>
    %158 = vector.broadcast %157 : vector<8x1xf32> to vector<8x8xf32>
    %159 = arith.mulf %154, %158 : vector<8x8xf32>
    %cst_102 = arith.constant dense<0.000000e+00> : vector<8x8xf32>
    %160 = tpu.matmul %159, %146, %cst_102 {dimension_numbers = #tpu.dot_dimension_numbers<[1], [0], [0], [1], [0, 0, 1, 1], [], []>} : vector<8x8xf32>, vector<8x8xf32>, vector<8x8xf32> -> vector<8x8xf32>
    %161 = tpu.concatenate %64, %96, %128, %160 in 1 : vector<8x8xf32>, vector<8x8xf32>, vector<8x8xf32>, vector<8x8xf32> -> vector<8x32xf32>
    %c0_103 = arith.constant 0 : index
    %c0_104 = arith.constant 0 : index
    %c0_105 = arith.constant 0 : index
    %162 = vector.load %arg5[%c0_103, %c0_104, %c0_105] : memref<2x32x32xf32, #tpu.memory_space<vmem>>, vector<1x32x32xf32>
    %163 = vector.shape_cast %162 : vector<1x32x32xf32> to vector<32x32xf32>
    %cst_106 = arith.constant dense<0.000000e+00> : vector<8x32xf32>
    %164 = tpu.matmul %161, %163, %cst_106 {dimension_numbers = #tpu.dot_dimension_numbers<[1], [0], [0], [1], [0, 0, 1, 1], [], []>} : vector<8x32xf32>, vector<32x32xf32>, vector<8x32xf32> -> vector<8x32xf32>
    %c14 = arith.constant 14 : index
    %c0_107 = arith.constant 0 : index
    %165 = vector.load %arg3[%c14, %c0_107] : memref<42x128xf32, #tpu.memory_space<vmem>>, vector<1x32xf32>
    %166 = vector.broadcast %165 : vector<1x32xf32> to vector<8x32xf32>
    %167 = arith.addf %164, %166 : vector<8x32xf32>
    %168 = arith.addf %32, %167 : vector<8x32xf32>
    %c15 = arith.constant 15 : index
    %c0_108 = arith.constant 0 : index
    %169 = vector.load %arg3[%c15, %c0_108] : memref<42x128xf32, #tpu.memory_space<vmem>>, vector<1x32xf32>
    %c16 = arith.constant 16 : index
    %c0_109 = arith.constant 0 : index
    %170 = vector.load %arg3[%c16, %c0_109] : memref<42x128xf32, #tpu.memory_space<vmem>>, vector<1x32xf32>
    %cst_110 = arith.constant dense<0.000000e+00> : vector<8xf32>
    %171 = vector.multi_reduction <add>, %168, %cst_110 [1] : vector<8x32xf32> to vector<8xf32>
    %172 = vector.shape_cast %171 : vector<8xf32> to vector<8x1xf32>
    %cst_111 = arith.constant 3.200000e+01 : f32
    %173 = vector.broadcast %cst_111 : f32 to vector<8x1xf32>
    %174 = arith.divf %172, %173 : vector<8x1xf32>
    %175 = vector.broadcast %174 : vector<8x1xf32> to vector<8x32xf32>
    %176 = arith.subf %168, %175 : vector<8x32xf32>
    %177 = arith.mulf %176, %176 : vector<8x32xf32>
    %cst_112 = arith.constant dense<0.000000e+00> : vector<8xf32>
    %178 = vector.multi_reduction <add>, %177, %cst_112 [1] : vector<8x32xf32> to vector<8xf32>
    %179 = vector.shape_cast %178 : vector<8xf32> to vector<8x1xf32>
    %cst_113 = arith.constant 3.200000e+01 : f32
    %180 = vector.broadcast %cst_113 : f32 to vector<8x1xf32>
    %181 = arith.divf %179, %180 : vector<8x1xf32>
    %182 = vector.broadcast %174 : vector<8x1xf32> to vector<8x32xf32>
    %183 = arith.subf %168, %182 : vector<8x32xf32>
    %cst_114 = arith.constant 9.99999996E-13 : f32
    %184 = vector.broadcast %cst_114 : f32 to vector<8x1xf32>
    %185 = arith.addf %181, %184 : vector<8x1xf32>
    %186 = math.rsqrt %185 : vector<8x1xf32>
    %187 = vector.broadcast %186 : vector<8x1xf32> to vector<8x32xf32>
    %188 = arith.mulf %183, %187 : vector<8x32xf32>
    %189 = vector.broadcast %169 : vector<1x32xf32> to vector<8x32xf32>
    %190 = arith.mulf %188, %189 : vector<8x32xf32>
    %191 = vector.broadcast %170 : vector<1x32xf32> to vector<8x32xf32>
    %192 = arith.addf %190, %191 : vector<8x32xf32>
    %c0_115 = arith.constant 0 : index
    %c0_116 = arith.constant 0 : index
    %c0_117 = arith.constant 0 : index
    %193 = vector.load %arg6[%c0_115, %c0_116, %c0_117] : memref<2x32x64xf32, #tpu.memory_space<vmem>>, vector<1x32x64xf32>
    %194 = vector.shape_cast %193 : vector<1x32x64xf32> to vector<32x64xf32>
    %cst_118 = arith.constant dense<0.000000e+00> : vector<8x64xf32>
    %195 = tpu.matmul %192, %194, %cst_118 {dimension_numbers = #tpu.dot_dimension_numbers<[1], [0], [0], [1], [0, 0, 1, 1], [], []>} : vector<8x32xf32>, vector<32x64xf32>, vector<8x64xf32> -> vector<8x64xf32>
    %c17 = arith.constant 17 : index
    %c0_119 = arith.constant 0 : index
    %196 = vector.load %arg3[%c17, %c0_119] : memref<42x128xf32, #tpu.memory_space<vmem>>, vector<1x64xf32>
    %197 = vector.broadcast %196 : vector<1x64xf32> to vector<8x64xf32>
    %198 = arith.addf %195, %197 : vector<8x64xf32>
    %199 = arith.mulf %198, %198 : vector<8x64xf32>
    %200 = arith.mulf %198, %199 : vector<8x64xf32>
    %cst_120 = arith.constant 4.471500e-02 : f32
    %201 = vector.broadcast %cst_120 : f32 to vector<8x64xf32>
    %202 = arith.mulf %201, %200 : vector<8x64xf32>
    %203 = arith.addf %198, %202 : vector<8x64xf32>
    %cst_121 = arith.constant 0.797884583 : f32
    %204 = vector.broadcast %cst_121 : f32 to vector<8x64xf32>
    %205 = arith.mulf %204, %203 : vector<8x64xf32>
    %206 = math.tanh %205 : vector<8x64xf32>
    %cst_122 = arith.constant 1.000000e+00 : f32
    %207 = vector.broadcast %cst_122 : f32 to vector<8x64xf32>
    %208 = arith.addf %207, %206 : vector<8x64xf32>
    %cst_123 = arith.constant 5.000000e-01 : f32
    %209 = vector.broadcast %cst_123 : f32 to vector<8x64xf32>
    %210 = arith.mulf %209, %208 : vector<8x64xf32>
    %211 = arith.mulf %198, %210 : vector<8x64xf32>
    %c0_124 = arith.constant 0 : index
    %c0_125 = arith.constant 0 : index
    %c0_126 = arith.constant 0 : index
    %212 = vector.load %arg7[%c0_124, %c0_125, %c0_126] : memref<2x64x32xf32, #tpu.memory_space<vmem>>, vector<1x64x32xf32>
    %213 = vector.shape_cast %212 : vector<1x64x32xf32> to vector<64x32xf32>
    %cst_127 = arith.constant dense<0.000000e+00> : vector<8x32xf32>
    %214 = tpu.matmul %211, %213, %cst_127 {dimension_numbers = #tpu.dot_dimension_numbers<[1], [0], [0], [1], [0, 0, 1, 1], [], []>} : vector<8x64xf32>, vector<64x32xf32>, vector<8x32xf32> -> vector<8x32xf32>
    %c18 = arith.constant 18 : index
    %c0_128 = arith.constant 0 : index
    %215 = vector.load %arg3[%c18, %c0_128] : memref<42x128xf32, #tpu.memory_space<vmem>>, vector<1x32xf32>
    %216 = vector.broadcast %215 : vector<1x32xf32> to vector<8x32xf32>
    %217 = arith.addf %214, %216 : vector<8x32xf32>
    %218 = arith.addf %192, %217 : vector<8x32xf32>
    %c19 = arith.constant 19 : index
    %c0_129 = arith.constant 0 : index
    %219 = vector.load %arg3[%c19, %c0_129] : memref<42x128xf32, #tpu.memory_space<vmem>>, vector<1x32xf32>
    %c20 = arith.constant 20 : index
    %c0_130 = arith.constant 0 : index
    %220 = vector.load %arg3[%c20, %c0_130] : memref<42x128xf32, #tpu.memory_space<vmem>>, vector<1x32xf32>
    %cst_131 = arith.constant dense<0.000000e+00> : vector<8xf32>
    %221 = vector.multi_reduction <add>, %218, %cst_131 [1] : vector<8x32xf32> to vector<8xf32>
    %222 = vector.shape_cast %221 : vector<8xf32> to vector<8x1xf32>
    %cst_132 = arith.constant 3.200000e+01 : f32
    %223 = vector.broadcast %cst_132 : f32 to vector<8x1xf32>
    %224 = arith.divf %222, %223 : vector<8x1xf32>
    %225 = vector.broadcast %224 : vector<8x1xf32> to vector<8x32xf32>
    %226 = arith.subf %218, %225 : vector<8x32xf32>
    %227 = arith.mulf %226, %226 : vector<8x32xf32>
    %cst_133 = arith.constant dense<0.000000e+00> : vector<8xf32>
    %228 = vector.multi_reduction <add>, %227, %cst_133 [1] : vector<8x32xf32> to vector<8xf32>
    %229 = vector.shape_cast %228 : vector<8xf32> to vector<8x1xf32>
    %cst_134 = arith.constant 3.200000e+01 : f32
    %230 = vector.broadcast %cst_134 : f32 to vector<8x1xf32>
    %231 = arith.divf %229, %230 : vector<8x1xf32>
    %232 = vector.broadcast %224 : vector<8x1xf32> to vector<8x32xf32>
    %233 = arith.subf %218, %232 : vector<8x32xf32>
    %cst_135 = arith.constant 9.99999996E-13 : f32
    %234 = vector.broadcast %cst_135 : f32 to vector<8x1xf32>
    %235 = arith.addf %231, %234 : vector<8x1xf32>
    %236 = math.rsqrt %235 : vector<8x1xf32>
    %237 = vector.broadcast %236 : vector<8x1xf32> to vector<8x32xf32>
    %238 = arith.mulf %233, %237 : vector<8x32xf32>
    %239 = vector.broadcast %219 : vector<1x32xf32> to vector<8x32xf32>
    %240 = arith.mulf %238, %239 : vector<8x32xf32>
    %241 = vector.broadcast %220 : vector<1x32xf32> to vector<8x32xf32>
    %242 = arith.addf %240, %241 : vector<8x32xf32>
    %c1_136 = arith.constant 1 : index
    %c0_137 = arith.constant 0 : index
    %c0_138 = arith.constant 0 : index
    %c0_139 = arith.constant 0 : index
    %243 = vector.load %arg4[%c1_136, %c0_137, %c0_138, %c0_139] : memref<2x12x32x8xf32, #tpu.memory_space<vmem>>, vector<1x1x32x8xf32>
    %244 = vector.shape_cast %243 : vector<1x1x32x8xf32> to vector<32x8xf32>
    %cst_140 = arith.constant dense<0.000000e+00> : vector<8x8xf32>
    %245 = tpu.matmul %242, %244, %cst_140 {dimension_numbers = #tpu.dot_dimension_numbers<[1], [0], [0], [1], [0, 0, 1, 1], [], []>} : vector<8x32xf32>, vector<32x8xf32>, vector<8x8xf32> -> vector<8x8xf32>
    %c21 = arith.constant 21 : index
    %c0_141 = arith.constant 0 : index
    %246 = vector.load %arg3[%c21, %c0_141] : memref<42x128xf32, #tpu.memory_space<vmem>>, vector<1x8xf32>
    %247 = vector.broadcast %246 : vector<1x8xf32> to vector<8x8xf32>
    %248 = arith.addf %245, %247 : vector<8x8xf32>
    %c1_142 = arith.constant 1 : index
    %c4_143 = arith.constant 4 : index
    %c0_144 = arith.constant 0 : index
    %c0_145 = arith.constant 0 : index
    %249 = vector.load %arg4[%c1_142, %c4_143, %c0_144, %c0_145] : memref<2x12x32x8xf32, #tpu.memory_space<vmem>>, vector<1x1x32x8xf32>
    %250 = vector.shape_cast %249 : vector<1x1x32x8xf32> to vector<32x8xf32>
    %cst_146 = arith.constant dense<0.000000e+00> : vector<8x8xf32>
    %251 = tpu.matmul %242, %250, %cst_146 {dimension_numbers = #tpu.dot_dimension_numbers<[1], [0], [0], [1], [0, 0, 1, 1], [], []>} : vector<8x32xf32>, vector<32x8xf32>, vector<8x8xf32> -> vector<8x8xf32>
    %c25 = arith.constant 25 : index
    %c0_147 = arith.constant 0 : index
    %252 = vector.load %arg3[%c25, %c0_147] : memref<42x128xf32, #tpu.memory_space<vmem>>, vector<1x8xf32>
    %253 = vector.broadcast %252 : vector<1x8xf32> to vector<8x8xf32>
    %254 = arith.addf %251, %253 : vector<8x8xf32>
    %c1_148 = arith.constant 1 : index
    %c8_149 = arith.constant 8 : index
    %c0_150 = arith.constant 0 : index
    %c0_151 = arith.constant 0 : index
    %255 = vector.load %arg4[%c1_148, %c8_149, %c0_150, %c0_151] : memref<2x12x32x8xf32, #tpu.memory_space<vmem>>, vector<1x1x32x8xf32>
    %256 = vector.shape_cast %255 : vector<1x1x32x8xf32> to vector<32x8xf32>
    %cst_152 = arith.constant dense<0.000000e+00> : vector<8x8xf32>
    %257 = tpu.matmul %242, %256, %cst_152 {dimension_numbers = #tpu.dot_dimension_numbers<[1], [0], [0], [1], [0, 0, 1, 1], [], []>} : vector<8x32xf32>, vector<32x8xf32>, vector<8x8xf32> -> vector<8x8xf32>
    %c29 = arith.constant 29 : index
    %c0_153 = arith.constant 0 : index
    %258 = vector.load %arg3[%c29, %c0_153] : memref<42x128xf32, #tpu.memory_space<vmem>>, vector<1x8xf32>
    %259 = vector.broadcast %258 : vector<1x8xf32> to vector<8x8xf32>
    %260 = arith.addf %257, %259 : vector<8x8xf32>
    %cst_154 = arith.constant dense<0.000000e+00> : vector<8x8xf32>
    %261 = tpu.matmul %248, %254, %cst_154 {dimension_numbers = #tpu.dot_dimension_numbers<[1], [1], [0], [0], [0, 0, 1, 0], [], []>} : vector<8x8xf32>, vector<8x8xf32>, vector<8x8xf32> -> vector<8x8xf32>
    %262 = vector.broadcast %8 : vector<1x8xf32> to vector<8x8xf32>
    %263 = arith.addf %261, %262 : vector<8x8xf32>
    %cst_155 = arith.constant dense<0xFF800000> : vector<8xf32>
    %264 = vector.multi_reduction <maximumf>, %263, %cst_155 [1] : vector<8x8xf32> to vector<8xf32>
    %265 = vector.shape_cast %264 : vector<8xf32> to vector<8x1xf32>
    %266 = vector.broadcast %265 : vector<8x1xf32> to vector<8x8xf32>
    %267 = arith.subf %263, %266 : vector<8x8xf32>
    %268 = math.exp %267 : vector<8x8xf32>
    %cst_156 = arith.constant dense<0.000000e+00> : vector<8xf32>
    %269 = vector.multi_reduction <add>, %268, %cst_156 [1] : vector<8x8xf32> to vector<8xf32>
    %270 = vector.shape_cast %269 : vector<8xf32> to vector<8x1xf32>
    %271 = tpu.reciprocal %270 {approx = true} : vector<8x1xf32> -> vector<8x1xf32>
    %272 = vector.broadcast %271 : vector<8x1xf32> to vector<8x8xf32>
    %273 = arith.mulf %268, %272 : vector<8x8xf32>
    %cst_157 = arith.constant dense<0.000000e+00> : vector<8x8xf32>
    %274 = tpu.matmul %273, %260, %cst_157 {dimension_numbers = #tpu.dot_dimension_numbers<[1], [0], [0], [1], [0, 0, 1, 1], [], []>} : vector<8x8xf32>, vector<8x8xf32>, vector<8x8xf32> -> vector<8x8xf32>
    %c1_158 = arith.constant 1 : index
    %c1_159 = arith.constant 1 : index
    %c0_160 = arith.constant 0 : index
    %c0_161 = arith.constant 0 : index
    %275 = vector.load %arg4[%c1_158, %c1_159, %c0_160, %c0_161] : memref<2x12x32x8xf32, #tpu.memory_space<vmem>>, vector<1x1x32x8xf32>
    %276 = vector.shape_cast %275 : vector<1x1x32x8xf32> to vector<32x8xf32>
    %cst_162 = arith.constant dense<0.000000e+00> : vector<8x8xf32>
    %277 = tpu.matmul %242, %276, %cst_162 {dimension_numbers = #tpu.dot_dimension_numbers<[1], [0], [0], [1], [0, 0, 1, 1], [], []>} : vector<8x32xf32>, vector<32x8xf32>, vector<8x8xf32> -> vector<8x8xf32>
    %c22 = arith.constant 22 : index
    %c0_163 = arith.constant 0 : index
    %278 = vector.load %arg3[%c22, %c0_163] : memref<42x128xf32, #tpu.memory_space<vmem>>, vector<1x8xf32>
    %279 = vector.broadcast %278 : vector<1x8xf32> to vector<8x8xf32>
    %280 = arith.addf %277, %279 : vector<8x8xf32>
    %c1_164 = arith.constant 1 : index
    %c5_165 = arith.constant 5 : index
    %c0_166 = arith.constant 0 : index
    %c0_167 = arith.constant 0 : index
    %281 = vector.load %arg4[%c1_164, %c5_165, %c0_166, %c0_167] : memref<2x12x32x8xf32, #tpu.memory_space<vmem>>, vector<1x1x32x8xf32>
    %282 = vector.shape_cast %281 : vector<1x1x32x8xf32> to vector<32x8xf32>
    %cst_168 = arith.constant dense<0.000000e+00> : vector<8x8xf32>
    %283 = tpu.matmul %242, %282, %cst_168 {dimension_numbers = #tpu.dot_dimension_numbers<[1], [0], [0], [1], [0, 0, 1, 1], [], []>} : vector<8x32xf32>, vector<32x8xf32>, vector<8x8xf32> -> vector<8x8xf32>
    %c26 = arith.constant 26 : index
    %c0_169 = arith.constant 0 : index
    %284 = vector.load %arg3[%c26, %c0_169] : memref<42x128xf32, #tpu.memory_space<vmem>>, vector<1x8xf32>
    %285 = vector.broadcast %284 : vector<1x8xf32> to vector<8x8xf32>
    %286 = arith.addf %283, %285 : vector<8x8xf32>
    %c1_170 = arith.constant 1 : index
    %c9_171 = arith.constant 9 : index
    %c0_172 = arith.constant 0 : index
    %c0_173 = arith.constant 0 : index
    %287 = vector.load %arg4[%c1_170, %c9_171, %c0_172, %c0_173] : memref<2x12x32x8xf32, #tpu.memory_space<vmem>>, vector<1x1x32x8xf32>
    %288 = vector.shape_cast %287 : vector<1x1x32x8xf32> to vector<32x8xf32>
    %cst_174 = arith.constant dense<0.000000e+00> : vector<8x8xf32>
    %289 = tpu.matmul %242, %288, %cst_174 {dimension_numbers = #tpu.dot_dimension_numbers<[1], [0], [0], [1], [0, 0, 1, 1], [], []>} : vector<8x32xf32>, vector<32x8xf32>, vector<8x8xf32> -> vector<8x8xf32>
    %c30 = arith.constant 30 : index
    %c0_175 = arith.constant 0 : index
    %290 = vector.load %arg3[%c30, %c0_175] : memref<42x128xf32, #tpu.memory_space<vmem>>, vector<1x8xf32>
    %291 = vector.broadcast %290 : vector<1x8xf32> to vector<8x8xf32>
    %292 = arith.addf %289, %291 : vector<8x8xf32>
    %cst_176 = arith.constant dense<0.000000e+00> : vector<8x8xf32>
    %293 = tpu.matmul %280, %286, %cst_176 {dimension_numbers = #tpu.dot_dimension_numbers<[1], [1], [0], [0], [0, 0, 1, 0], [], []>} : vector<8x8xf32>, vector<8x8xf32>, vector<8x8xf32> -> vector<8x8xf32>
    %294 = vector.broadcast %8 : vector<1x8xf32> to vector<8x8xf32>
    %295 = arith.addf %293, %294 : vector<8x8xf32>
    %cst_177 = arith.constant dense<0xFF800000> : vector<8xf32>
    %296 = vector.multi_reduction <maximumf>, %295, %cst_177 [1] : vector<8x8xf32> to vector<8xf32>
    %297 = vector.shape_cast %296 : vector<8xf32> to vector<8x1xf32>
    %298 = vector.broadcast %297 : vector<8x1xf32> to vector<8x8xf32>
    %299 = arith.subf %295, %298 : vector<8x8xf32>
    %300 = math.exp %299 : vector<8x8xf32>
    %cst_178 = arith.constant dense<0.000000e+00> : vector<8xf32>
    %301 = vector.multi_reduction <add>, %300, %cst_178 [1] : vector<8x8xf32> to vector<8xf32>
    %302 = vector.shape_cast %301 : vector<8xf32> to vector<8x1xf32>
    %303 = tpu.reciprocal %302 {approx = true} : vector<8x1xf32> -> vector<8x1xf32>
    %304 = vector.broadcast %303 : vector<8x1xf32> to vector<8x8xf32>
    %305 = arith.mulf %300, %304 : vector<8x8xf32>
    %cst_179 = arith.constant dense<0.000000e+00> : vector<8x8xf32>
    %306 = tpu.matmul %305, %292, %cst_179 {dimension_numbers = #tpu.dot_dimension_numbers<[1], [0], [0], [1], [0, 0, 1, 1], [], []>} : vector<8x8xf32>, vector<8x8xf32>, vector<8x8xf32> -> vector<8x8xf32>
    %c1_180 = arith.constant 1 : index
    %c2_181 = arith.constant 2 : index
    %c0_182 = arith.constant 0 : index
    %c0_183 = arith.constant 0 : index
    %307 = vector.load %arg4[%c1_180, %c2_181, %c0_182, %c0_183] : memref<2x12x32x8xf32, #tpu.memory_space<vmem>>, vector<1x1x32x8xf32>
    %308 = vector.shape_cast %307 : vector<1x1x32x8xf32> to vector<32x8xf32>
    %cst_184 = arith.constant dense<0.000000e+00> : vector<8x8xf32>
    %309 = tpu.matmul %242, %308, %cst_184 {dimension_numbers = #tpu.dot_dimension_numbers<[1], [0], [0], [1], [0, 0, 1, 1], [], []>} : vector<8x32xf32>, vector<32x8xf32>, vector<8x8xf32> -> vector<8x8xf32>
    %c23 = arith.constant 23 : index
    %c0_185 = arith.constant 0 : index
    %310 = vector.load %arg3[%c23, %c0_185] : memref<42x128xf32, #tpu.memory_space<vmem>>, vector<1x8xf32>
    %311 = vector.broadcast %310 : vector<1x8xf32> to vector<8x8xf32>
    %312 = arith.addf %309, %311 : vector<8x8xf32>
    %c1_186 = arith.constant 1 : index
    %c6_187 = arith.constant 6 : index
    %c0_188 = arith.constant 0 : index
    %c0_189 = arith.constant 0 : index
    %313 = vector.load %arg4[%c1_186, %c6_187, %c0_188, %c0_189] : memref<2x12x32x8xf32, #tpu.memory_space<vmem>>, vector<1x1x32x8xf32>
    %314 = vector.shape_cast %313 : vector<1x1x32x8xf32> to vector<32x8xf32>
    %cst_190 = arith.constant dense<0.000000e+00> : vector<8x8xf32>
    %315 = tpu.matmul %242, %314, %cst_190 {dimension_numbers = #tpu.dot_dimension_numbers<[1], [0], [0], [1], [0, 0, 1, 1], [], []>} : vector<8x32xf32>, vector<32x8xf32>, vector<8x8xf32> -> vector<8x8xf32>
    %c27 = arith.constant 27 : index
    %c0_191 = arith.constant 0 : index
    %316 = vector.load %arg3[%c27, %c0_191] : memref<42x128xf32, #tpu.memory_space<vmem>>, vector<1x8xf32>
    %317 = vector.broadcast %316 : vector<1x8xf32> to vector<8x8xf32>
    %318 = arith.addf %315, %317 : vector<8x8xf32>
    %c1_192 = arith.constant 1 : index
    %c10_193 = arith.constant 10 : index
    %c0_194 = arith.constant 0 : index
    %c0_195 = arith.constant 0 : index
    %319 = vector.load %arg4[%c1_192, %c10_193, %c0_194, %c0_195] : memref<2x12x32x8xf32, #tpu.memory_space<vmem>>, vector<1x1x32x8xf32>
    %320 = vector.shape_cast %319 : vector<1x1x32x8xf32> to vector<32x8xf32>
    %cst_196 = arith.constant dense<0.000000e+00> : vector<8x8xf32>
    %321 = tpu.matmul %242, %320, %cst_196 {dimension_numbers = #tpu.dot_dimension_numbers<[1], [0], [0], [1], [0, 0, 1, 1], [], []>} : vector<8x32xf32>, vector<32x8xf32>, vector<8x8xf32> -> vector<8x8xf32>
    %c31 = arith.constant 31 : index
    %c0_197 = arith.constant 0 : index
    %322 = vector.load %arg3[%c31, %c0_197] : memref<42x128xf32, #tpu.memory_space<vmem>>, vector<1x8xf32>
    %323 = vector.broadcast %322 : vector<1x8xf32> to vector<8x8xf32>
    %324 = arith.addf %321, %323 : vector<8x8xf32>
    %cst_198 = arith.constant dense<0.000000e+00> : vector<8x8xf32>
    %325 = tpu.matmul %312, %318, %cst_198 {dimension_numbers = #tpu.dot_dimension_numbers<[1], [1], [0], [0], [0, 0, 1, 0], [], []>} : vector<8x8xf32>, vector<8x8xf32>, vector<8x8xf32> -> vector<8x8xf32>
    %326 = vector.broadcast %8 : vector<1x8xf32> to vector<8x8xf32>
    %327 = arith.addf %325, %326 : vector<8x8xf32>
    %cst_199 = arith.constant dense<0xFF800000> : vector<8xf32>
    %328 = vector.multi_reduction <maximumf>, %327, %cst_199 [1] : vector<8x8xf32> to vector<8xf32>
    %329 = vector.shape_cast %328 : vector<8xf32> to vector<8x1xf32>
    %330 = vector.broadcast %329 : vector<8x1xf32> to vector<8x8xf32>
    %331 = arith.subf %327, %330 : vector<8x8xf32>
    %332 = math.exp %331 : vector<8x8xf32>
    %cst_200 = arith.constant dense<0.000000e+00> : vector<8xf32>
    %333 = vector.multi_reduction <add>, %332, %cst_200 [1] : vector<8x8xf32> to vector<8xf32>
    %334 = vector.shape_cast %333 : vector<8xf32> to vector<8x1xf32>
    %335 = tpu.reciprocal %334 {approx = true} : vector<8x1xf32> -> vector<8x1xf32>
    %336 = vector.broadcast %335 : vector<8x1xf32> to vector<8x8xf32>
    %337 = arith.mulf %332, %336 : vector<8x8xf32>
    %cst_201 = arith.constant dense<0.000000e+00> : vector<8x8xf32>
    %338 = tpu.matmul %337, %324, %cst_201 {dimension_numbers = #tpu.dot_dimension_numbers<[1], [0], [0], [1], [0, 0, 1, 1], [], []>} : vector<8x8xf32>, vector<8x8xf32>, vector<8x8xf32> -> vector<8x8xf32>
    %c1_202 = arith.constant 1 : index
    %c3_203 = arith.constant 3 : index
    %c0_204 = arith.constant 0 : index
    %c0_205 = arith.constant 0 : index
    %339 = vector.load %arg4[%c1_202, %c3_203, %c0_204, %c0_205] : memref<2x12x32x8xf32, #tpu.memory_space<vmem>>, vector<1x1x32x8xf32>
    %340 = vector.shape_cast %339 : vector<1x1x32x8xf32> to vector<32x8xf32>
    %cst_206 = arith.constant dense<0.000000e+00> : vector<8x8xf32>
    %341 = tpu.matmul %242, %340, %cst_206 {dimension_numbers = #tpu.dot_dimension_numbers<[1], [0], [0], [1], [0, 0, 1, 1], [], []>} : vector<8x32xf32>, vector<32x8xf32>, vector<8x8xf32> -> vector<8x8xf32>
    %c24 = arith.constant 24 : index
    %c0_207 = arith.constant 0 : index
    %342 = vector.load %arg3[%c24, %c0_207] : memref<42x128xf32, #tpu.memory_space<vmem>>, vector<1x8xf32>
    %343 = vector.broadcast %342 : vector<1x8xf32> to vector<8x8xf32>
    %344 = arith.addf %341, %343 : vector<8x8xf32>
    %c1_208 = arith.constant 1 : index
    %c7_209 = arith.constant 7 : index
    %c0_210 = arith.constant 0 : index
    %c0_211 = arith.constant 0 : index
    %345 = vector.load %arg4[%c1_208, %c7_209, %c0_210, %c0_211] : memref<2x12x32x8xf32, #tpu.memory_space<vmem>>, vector<1x1x32x8xf32>
    %346 = vector.shape_cast %345 : vector<1x1x32x8xf32> to vector<32x8xf32>
    %cst_212 = arith.constant dense<0.000000e+00> : vector<8x8xf32>
    %347 = tpu.matmul %242, %346, %cst_212 {dimension_numbers = #tpu.dot_dimension_numbers<[1], [0], [0], [1], [0, 0, 1, 1], [], []>} : vector<8x32xf32>, vector<32x8xf32>, vector<8x8xf32> -> vector<8x8xf32>
    %c28 = arith.constant 28 : index
    %c0_213 = arith.constant 0 : index
    %348 = vector.load %arg3[%c28, %c0_213] : memref<42x128xf32, #tpu.memory_space<vmem>>, vector<1x8xf32>
    %349 = vector.broadcast %348 : vector<1x8xf32> to vector<8x8xf32>
    %350 = arith.addf %347, %349 : vector<8x8xf32>
    %c1_214 = arith.constant 1 : index
    %c11_215 = arith.constant 11 : index
    %c0_216 = arith.constant 0 : index
    %c0_217 = arith.constant 0 : index
    %351 = vector.load %arg4[%c1_214, %c11_215, %c0_216, %c0_217] : memref<2x12x32x8xf32, #tpu.memory_space<vmem>>, vector<1x1x32x8xf32>
    %352 = vector.shape_cast %351 : vector<1x1x32x8xf32> to vector<32x8xf32>
    %cst_218 = arith.constant dense<0.000000e+00> : vector<8x8xf32>
    %353 = tpu.matmul %242, %352, %cst_218 {dimension_numbers = #tpu.dot_dimension_numbers<[1], [0], [0], [1], [0, 0, 1, 1], [], []>} : vector<8x32xf32>, vector<32x8xf32>, vector<8x8xf32> -> vector<8x8xf32>
    %c32 = arith.constant 32 : index
    %c0_219 = arith.constant 0 : index
    %354 = vector.load %arg3[%c32, %c0_219] : memref<42x128xf32, #tpu.memory_space<vmem>>, vector<1x8xf32>
    %355 = vector.broadcast %354 : vector<1x8xf32> to vector<8x8xf32>
    %356 = arith.addf %353, %355 : vector<8x8xf32>
    %cst_220 = arith.constant dense<0.000000e+00> : vector<8x8xf32>
    %357 = tpu.matmul %344, %350, %cst_220 {dimension_numbers = #tpu.dot_dimension_numbers<[1], [1], [0], [0], [0, 0, 1, 0], [], []>} : vector<8x8xf32>, vector<8x8xf32>, vector<8x8xf32> -> vector<8x8xf32>
    %358 = vector.broadcast %8 : vector<1x8xf32> to vector<8x8xf32>
    %359 = arith.addf %357, %358 : vector<8x8xf32>
    %cst_221 = arith.constant dense<0xFF800000> : vector<8xf32>
    %360 = vector.multi_reduction <maximumf>, %359, %cst_221 [1] : vector<8x8xf32> to vector<8xf32>
    %361 = vector.shape_cast %360 : vector<8xf32> to vector<8x1xf32>
    %362 = vector.broadcast %361 : vector<8x1xf32> to vector<8x8xf32>
    %363 = arith.subf %359, %362 : vector<8x8xf32>
    %364 = math.exp %363 : vector<8x8xf32>
    %cst_222 = arith.constant dense<0.000000e+00> : vector<8xf32>
    %365 = vector.multi_reduction <add>, %364, %cst_222 [1] : vector<8x8xf32> to vector<8xf32>
    %366 = vector.shape_cast %365 : vector<8xf32> to vector<8x1xf32>
    %367 = tpu.reciprocal %366 {approx = true} : vector<8x1xf32> -> vector<8x1xf32>
    %368 = vector.broadcast %367 : vector<8x1xf32> to vector<8x8xf32>
    %369 = arith.mulf %364, %368 : vector<8x8xf32>
    %cst_223 = arith.constant dense<0.000000e+00> : vector<8x8xf32>
    %370 = tpu.matmul %369, %356, %cst_223 {dimension_numbers = #tpu.dot_dimension_numbers<[1], [0], [0], [1], [0, 0, 1, 1], [], []>} : vector<8x8xf32>, vector<8x8xf32>, vector<8x8xf32> -> vector<8x8xf32>
    %371 = tpu.concatenate %274, %306, %338, %370 in 1 : vector<8x8xf32>, vector<8x8xf32>, vector<8x8xf32>, vector<8x8xf32> -> vector<8x32xf32>
    %c1_224 = arith.constant 1 : index
    %c0_225 = arith.constant 0 : index
    %c0_226 = arith.constant 0 : index
    %372 = vector.load %arg5[%c1_224, %c0_225, %c0_226] : memref<2x32x32xf32, #tpu.memory_space<vmem>>, vector<1x32x32xf32>
    %373 = vector.shape_cast %372 : vector<1x32x32xf32> to vector<32x32xf32>
    %cst_227 = arith.constant dense<0.000000e+00> : vector<8x32xf32>
    %374 = tpu.matmul %371, %373, %cst_227 {dimension_numbers = #tpu.dot_dimension_numbers<[1], [0], [0], [1], [0, 0, 1, 1], [], []>} : vector<8x32xf32>, vector<32x32xf32>, vector<8x32xf32> -> vector<8x32xf32>
    %c33 = arith.constant 33 : index
    %c0_228 = arith.constant 0 : index
    %375 = vector.load %arg3[%c33, %c0_228] : memref<42x128xf32, #tpu.memory_space<vmem>>, vector<1x32xf32>
    %376 = vector.broadcast %375 : vector<1x32xf32> to vector<8x32xf32>
    %377 = arith.addf %374, %376 : vector<8x32xf32>
    %378 = arith.addf %242, %377 : vector<8x32xf32>
    %c34 = arith.constant 34 : index
    %c0_229 = arith.constant 0 : index
    %379 = vector.load %arg3[%c34, %c0_229] : memref<42x128xf32, #tpu.memory_space<vmem>>, vector<1x32xf32>
    %c35 = arith.constant 35 : index
    %c0_230 = arith.constant 0 : index
    %380 = vector.load %arg3[%c35, %c0_230] : memref<42x128xf32, #tpu.memory_space<vmem>>, vector<1x32xf32>
    %cst_231 = arith.constant dense<0.000000e+00> : vector<8xf32>
    %381 = vector.multi_reduction <add>, %378, %cst_231 [1] : vector<8x32xf32> to vector<8xf32>
    %382 = vector.shape_cast %381 : vector<8xf32> to vector<8x1xf32>
    %cst_232 = arith.constant 3.200000e+01 : f32
    %383 = vector.broadcast %cst_232 : f32 to vector<8x1xf32>
    %384 = arith.divf %382, %383 : vector<8x1xf32>
    %385 = vector.broadcast %384 : vector<8x1xf32> to vector<8x32xf32>
    %386 = arith.subf %378, %385 : vector<8x32xf32>
    %387 = arith.mulf %386, %386 : vector<8x32xf32>
    %cst_233 = arith.constant dense<0.000000e+00> : vector<8xf32>
    %388 = vector.multi_reduction <add>, %387, %cst_233 [1] : vector<8x32xf32> to vector<8xf32>
    %389 = vector.shape_cast %388 : vector<8xf32> to vector<8x1xf32>
    %cst_234 = arith.constant 3.200000e+01 : f32
    %390 = vector.broadcast %cst_234 : f32 to vector<8x1xf32>
    %391 = arith.divf %389, %390 : vector<8x1xf32>
    %392 = vector.broadcast %384 : vector<8x1xf32> to vector<8x32xf32>
    %393 = arith.subf %378, %392 : vector<8x32xf32>
    %cst_235 = arith.constant 9.99999996E-13 : f32
    %394 = vector.broadcast %cst_235 : f32 to vector<8x1xf32>
    %395 = arith.addf %391, %394 : vector<8x1xf32>
    %396 = math.rsqrt %395 : vector<8x1xf32>
    %397 = vector.broadcast %396 : vector<8x1xf32> to vector<8x32xf32>
    %398 = arith.mulf %393, %397 : vector<8x32xf32>
    %399 = vector.broadcast %379 : vector<1x32xf32> to vector<8x32xf32>
    %400 = arith.mulf %398, %399 : vector<8x32xf32>
    %401 = vector.broadcast %380 : vector<1x32xf32> to vector<8x32xf32>
    %402 = arith.addf %400, %401 : vector<8x32xf32>
    %c1_236 = arith.constant 1 : index
    %c0_237 = arith.constant 0 : index
    %c0_238 = arith.constant 0 : index
    %403 = vector.load %arg6[%c1_236, %c0_237, %c0_238] : memref<2x32x64xf32, #tpu.memory_space<vmem>>, vector<1x32x64xf32>
    %404 = vector.shape_cast %403 : vector<1x32x64xf32> to vector<32x64xf32>
    %cst_239 = arith.constant dense<0.000000e+00> : vector<8x64xf32>
    %405 = tpu.matmul %402, %404, %cst_239 {dimension_numbers = #tpu.dot_dimension_numbers<[1], [0], [0], [1], [0, 0, 1, 1], [], []>} : vector<8x32xf32>, vector<32x64xf32>, vector<8x64xf32> -> vector<8x64xf32>
    %c36 = arith.constant 36 : index
    %c0_240 = arith.constant 0 : index
    %406 = vector.load %arg3[%c36, %c0_240] : memref<42x128xf32, #tpu.memory_space<vmem>>, vector<1x64xf32>
    %407 = vector.broadcast %406 : vector<1x64xf32> to vector<8x64xf32>
    %408 = arith.addf %405, %407 : vector<8x64xf32>
    %409 = arith.mulf %408, %408 : vector<8x64xf32>
    %410 = arith.mulf %408, %409 : vector<8x64xf32>
    %cst_241 = arith.constant 4.471500e-02 : f32
    %411 = vector.broadcast %cst_241 : f32 to vector<8x64xf32>
    %412 = arith.mulf %411, %410 : vector<8x64xf32>
    %413 = arith.addf %408, %412 : vector<8x64xf32>
    %cst_242 = arith.constant 0.797884583 : f32
    %414 = vector.broadcast %cst_242 : f32 to vector<8x64xf32>
    %415 = arith.mulf %414, %413 : vector<8x64xf32>
    %416 = math.tanh %415 : vector<8x64xf32>
    %cst_243 = arith.constant 1.000000e+00 : f32
    %417 = vector.broadcast %cst_243 : f32 to vector<8x64xf32>
    %418 = arith.addf %417, %416 : vector<8x64xf32>
    %cst_244 = arith.constant 5.000000e-01 : f32
    %419 = vector.broadcast %cst_244 : f32 to vector<8x64xf32>
    %420 = arith.mulf %419, %418 : vector<8x64xf32>
    %421 = arith.mulf %408, %420 : vector<8x64xf32>
    %c1_245 = arith.constant 1 : index
    %c0_246 = arith.constant 0 : index
    %c0_247 = arith.constant 0 : index
    %422 = vector.load %arg7[%c1_245, %c0_246, %c0_247] : memref<2x64x32xf32, #tpu.memory_space<vmem>>, vector<1x64x32xf32>
    %423 = vector.shape_cast %422 : vector<1x64x32xf32> to vector<64x32xf32>
    %cst_248 = arith.constant dense<0.000000e+00> : vector<8x32xf32>
    %424 = tpu.matmul %421, %423, %cst_248 {dimension_numbers = #tpu.dot_dimension_numbers<[1], [0], [0], [1], [0, 0, 1, 1], [], []>} : vector<8x64xf32>, vector<64x32xf32>, vector<8x32xf32> -> vector<8x32xf32>
    %c37 = arith.constant 37 : index
    %c0_249 = arith.constant 0 : index
    %425 = vector.load %arg3[%c37, %c0_249] : memref<42x128xf32, #tpu.memory_space<vmem>>, vector<1x32xf32>
    %426 = vector.broadcast %425 : vector<1x32xf32> to vector<8x32xf32>
    %427 = arith.addf %424, %426 : vector<8x32xf32>
    %428 = arith.addf %402, %427 : vector<8x32xf32>
    %c38 = arith.constant 38 : index
    %c0_250 = arith.constant 0 : index
    %429 = vector.load %arg3[%c38, %c0_250] : memref<42x128xf32, #tpu.memory_space<vmem>>, vector<1x32xf32>
    %c39 = arith.constant 39 : index
    %c0_251 = arith.constant 0 : index
    %430 = vector.load %arg3[%c39, %c0_251] : memref<42x128xf32, #tpu.memory_space<vmem>>, vector<1x32xf32>
    %cst_252 = arith.constant dense<0.000000e+00> : vector<8xf32>
    %431 = vector.multi_reduction <add>, %428, %cst_252 [1] : vector<8x32xf32> to vector<8xf32>
    %432 = vector.shape_cast %431 : vector<8xf32> to vector<8x1xf32>
    %cst_253 = arith.constant 3.200000e+01 : f32
    %433 = vector.broadcast %cst_253 : f32 to vector<8x1xf32>
    %434 = arith.divf %432, %433 : vector<8x1xf32>
    %435 = vector.broadcast %434 : vector<8x1xf32> to vector<8x32xf32>
    %436 = arith.subf %428, %435 : vector<8x32xf32>
    %437 = arith.mulf %436, %436 : vector<8x32xf32>
    %cst_254 = arith.constant dense<0.000000e+00> : vector<8xf32>
    %438 = vector.multi_reduction <add>, %437, %cst_254 [1] : vector<8x32xf32> to vector<8xf32>
    %439 = vector.shape_cast %438 : vector<8xf32> to vector<8x1xf32>
    %cst_255 = arith.constant 3.200000e+01 : f32
    %440 = vector.broadcast %cst_255 : f32 to vector<8x1xf32>
    %441 = arith.divf %439, %440 : vector<8x1xf32>
    %442 = vector.broadcast %434 : vector<8x1xf32> to vector<8x32xf32>
    %443 = arith.subf %428, %442 : vector<8x32xf32>
    %cst_256 = arith.constant 9.99999996E-13 : f32
    %444 = vector.broadcast %cst_256 : f32 to vector<8x1xf32>
    %445 = arith.addf %441, %444 : vector<8x1xf32>
    %446 = math.rsqrt %445 : vector<8x1xf32>
    %447 = vector.broadcast %446 : vector<8x1xf32> to vector<8x32xf32>
    %448 = arith.mulf %443, %447 : vector<8x32xf32>
    %449 = vector.broadcast %429 : vector<1x32xf32> to vector<8x32xf32>
    %450 = arith.mulf %448, %449 : vector<8x32xf32>
    %451 = vector.broadcast %430 : vector<1x32xf32> to vector<8x32xf32>
    %452 = arith.addf %450, %451 : vector<8x32xf32>
    %453 = vector.extract_strided_slice %452 {offsets = [0, 0], sizes = [1, 32], strides = [1, 1]} : vector<8x32xf32> to vector<1x32xf32>
    %c0_257 = arith.constant 0 : index
    %c0_258 = arith.constant 0 : index
    %c0_259 = arith.constant 0 : index
    %454 = vector.load %arg8[%c0_257, %c0_258, %c0_259] : memref<2x32x32xf32, #tpu.memory_space<vmem>>, vector<1x32x32xf32>
    %455 = vector.shape_cast %454 : vector<1x32x32xf32> to vector<32x32xf32>
    %cst_260 = arith.constant dense<0.000000e+00> : vector<1x32xf32>
    %456 = tpu.matmul %453, %455, %cst_260 {dimension_numbers = #tpu.dot_dimension_numbers<[1], [0], [0], [1], [0, 0, 1, 1], [], []>} : vector<1x32xf32>, vector<32x32xf32>, vector<1x32xf32> -> vector<1x32xf32>
    %c40 = arith.constant 40 : index
    %c0_261 = arith.constant 0 : index
    %457 = vector.load %arg3[%c40, %c0_261] : memref<42x128xf32, #tpu.memory_space<vmem>>, vector<1x32xf32>
    %458 = arith.addf %456, %457 : vector<1x32xf32>
    %459 = math.tanh %458 : vector<1x32xf32>
    %c1_262 = arith.constant 1 : index
    %c0_263 = arith.constant 0 : index
    %c0_264 = arith.constant 0 : index
    %460 = vector.load %arg8[%c1_262, %c0_263, %c0_264] : memref<2x32x32xf32, #tpu.memory_space<vmem>>, vector<1x32x32xf32>
    %461 = vector.shape_cast %460 : vector<1x32x32xf32> to vector<32x32xf32>
    %cst_265 = arith.constant dense<0.000000e+00> : vector<1x32xf32>
    %462 = tpu.matmul %459, %461, %cst_265 {dimension_numbers = #tpu.dot_dimension_numbers<[1], [0], [0], [1], [0, 0, 1, 1], [], []>} : vector<1x32xf32>, vector<32x32xf32>, vector<1x32xf32> -> vector<1x32xf32>
    %463 = vector.extract_strided_slice %462 {offsets = [0, 0], sizes = [1, 6], strides = [1, 1]} : vector<1x32xf32> to vector<1x6xf32>
    %c41 = arith.constant 41 : index
    %c0_266 = arith.constant 0 : index
    %464 = vector.load %arg3[%c41, %c0_266] : memref<42x128xf32, #tpu.memory_space<vmem>>, vector<1x6xf32>
    %465 = arith.addf %463, %464 : vector<1x6xf32>
    %c0_267 = arith.constant 0 : index
    %c0_268 = arith.constant 0 : index
    %c0_269 = arith.constant 0 : index
    %466 = vector.load %arg9[%c0_267, %c0_268, %c0_269] : memref<1x1x6xf32, #tpu.memory_space<vmem>>, vector<1x1x6xf32>
    %467 = vector.shape_cast %466 : vector<1x1x6xf32> to vector<1x6xf32>
    %468 = vector.shape_cast %465 : vector<1x6xf32> to vector<1x1x6xf32>
    tpu.vector_store %arg9[%c0_267, %c0_268, %c0_269], %468 {strides = array<i32>} : memref<1x1x6xf32, #tpu.memory_space<vmem>>, vector<1x1x6xf32>,
    return
  }
  func.func @transform_0(%arg0: i32) -> (i32, i32, i32) {
    %c0_i32 = arith.constant 0 : i32
    %c0_i32_0 = arith.constant 0 : i32
    %c0_i32_1 = arith.constant 0 : i32
    return %arg0, %c0_i32, %c0_i32_0 : i32, i32, i32
  }
  func.func @transform_1(%arg0: i32) -> (i32, i32, i32) {
    %c0_i32 = arith.constant 0 : i32
    %c0_i32_0 = arith.constant 0 : i32
    %c0_i32_1 = arith.constant 0 : i32
    return %arg0, %c0_i32, %c0_i32_0 : i32, i32, i32
  }
  func.func @transform_2(%arg0: i32) -> (i32, i32) {
    %c0_i32 = arith.constant 0 : i32
    %c0_i32_0 = arith.constant 0 : i32
    %c0_i32_1 = arith.constant 0 : i32
    return %c0_i32, %c0_i32_0 : i32, i32
  }
  func.func @transform_3(%arg0: i32) -> (i32, i32, i32, i32) {
    %c0_i32 = arith.constant 0 : i32
    %c0_i32_0 = arith.constant 0 : i32
    %c0_i32_1 = arith.constant 0 : i32
    %c0_i32_2 = arith.constant 0 : i32
    %c0_i32_3 = arith.constant 0 : i32
    return %c0_i32, %c0_i32_0, %c0_i32_1, %c0_i32_2 : i32, i32, i32, i32
  }
  func.func @transform_4(%arg0: i32) -> (i32, i32, i32) {
    %c0_i32 = arith.constant 0 : i32
    %c0_i32_0 = arith.constant 0 : i32
    %c0_i32_1 = arith.constant 0 : i32
    %c0_i32_2 = arith.constant 0 : i32
    return %c0_i32, %c0_i32_0, %c0_i32_1 : i32, i32, i32
  }
  func.func @transform_5(%arg0: i32) -> (i32, i32, i32) {
    %c0_i32 = arith.constant 0 : i32
    %c0_i32_0 = arith.constant 0 : i32
    %c0_i32_1 = arith.constant 0 : i32
    %c0_i32_2 = arith.constant 0 : i32
    return %c0_i32, %c0_i32_0, %c0_i32_1 : i32, i32, i32
  }
  func.func @transform_6(%arg0: i32) -> (i32, i32, i32) {
    %c0_i32 = arith.constant 0 : i32
    %c0_i32_0 = arith.constant 0 : i32
    %c0_i32_1 = arith.constant 0 : i32
    %c0_i32_2 = arith.constant 0 : i32
    return %c0_i32, %c0_i32_0, %c0_i32_1 : i32, i32, i32
  }
  func.func @transform_7(%arg0: i32) -> (i32, i32, i32) {
    %c0_i32 = arith.constant 0 : i32
    %c0_i32_0 = arith.constant 0 : i32
    %c0_i32_1 = arith.constant 0 : i32
    %c0_i32_2 = arith.constant 0 : i32
    return %c0_i32, %c0_i32_0, %c0_i32_1 : i32, i32, i32
  }
  func.func @transform_8(%arg0: i32) -> (i32, i32, i32) {
    %c0_i32 = arith.constant 0 : i32
    %c0_i32_0 = arith.constant 0 : i32
    %c0_i32_1 = arith.constant 0 : i32
    return %arg0, %c0_i32, %c0_i32_0 : i32, i32, i32
  }
}

</mosaic_0001>

<bundles_post_ra>
// kernel: color_predictor_forward.1
= control target key start
LH: loop header
LB: loop body
LE: loop exit
PB: predicated region body
PF: predicated region fallthrough
CT: control target
= control target key end

     0   :  { %13 = vsyncpa [#allocation3], 0  ;;  %s3192_s0 = inlined_call_operand.vmem [shape: f32[2,1,8], index: 0, kind: input, shape index: {}]   ;;  %s3193_s1 = inlined_call_operand.vmem [shape: f32[2,8,32], index: 1, kind: input, shape index: {}]   ;;  %s3194_s2 = inlined_call_operand.vmem [shape: f32[42,128], index: 2, kind: input, shape index: {}]   ;;  %s3195_s3 = inlined_call_operand.vmem [shape: f32[2,12,32,8], index: 3, kind: input, shape index: {}]   ;;  %s3196_s4 = inlined_call_operand.vmem [shape: f32[2,32,32], index: 4, kind: input, shape index: {}]   ;;  %s3197_s5 = inlined_call_operand.vmem [shape: f32[2,32,64], index: 5, kind: input, shape index: {}]   ;;  %s3198_s6 = inlined_call_operand.vmem [shape: f32[2,64,32], index: 6, kind: input, shape index: {}]   ;;  %s3199_s7 = inlined_call_operand.vmem [shape: f32[2,32,32], index: 7, kind: input, shape index: {}]   ;;  %s3200_s8 = inlined_call_operand.hbm [shape: f32[2,1,6], index: 8, kind: output, shape index: {}]  }
   0x1   :  { %15 = vsyncpa [#allocation3 + $0x1], 0  ;;  %s2404_s27 = smov 0   ;;  %s2406_s28 = smov 0  }
   0x2   :  { %s2408_s29 = smov 0   ;;  %s2410_s30 = smov 0  }
   0x3 LB: > { %s2425_s9 = sadd.s32 4294967295, %s2352_s30   ;;  %s1981_s10 = sadd.s32 4294967294, %s2352_s30   ;;  %s2352_s30 = sphi %s2410_s30, %s3206_s30   ;;  %s2348_s29 = sphi %s2408_s29, %s3205_s29   ;;  %s2344_s28 = sphi %s2406_s28, %s3204_s28   ;;  %s2340_s27 = sphi %s2404_s27, %s3203_s27  }
   0x4   : > { %s2429_s11 = sadd.s32 1, %s2352_s30   ;;  %s206_s12 = sadd.s32 1, %s2348_s29 }
   0x5   : > { %s203_s13 = ssub.s32 %s2352_s30, %s2429_s11  ;;  %p216_p0 = scmp.ne.s32.totalorder %s2348_s29, %s2344_s28 }
   0x6   : > { %p204_p1 = scmp.eq.s32.totalorder %s203_s13, 0  ;;  %p217_p2 = scmp.eq.s32.totalorder %s2425_s9, 1 }
   0x7   : > { %p222_p3 = scmp.ne.s32.totalorder %s2344_s28, %s2340_s27  ;;  %p223_p4 = scmp.eq.s32.totalorder %s1981_s10, 1 }
   0x8   : > { %s2440_s14 = scalar_select %p204_p1, %s2348_s29, %s206_s12  }
   0x9   : > { %p2442_p5 = por %p217_p2, %p216_p0  ;;  %p2446_p6 = por %p223_p4, %p222_p3 }
   0xa   : > { %p1984_p7 = scmp.ge.s32.totalorder %s2352_s30, 1  ;;  %p272_p8 = scmp.lt.s32.totalorder %s2352_s30, 3 }
   0xc   : > { %p273_p9 = pnand %p1984_p7, %p272_p8 }
   0xd   : > { %p307_p10 = scmp.lt.s32.totalorder (!%p273_p9), %s2425_s9, 1  ;;  %s2356_s24 = smov (!%p273_p9), 8  }
   0xe   : > { %276 = sbr.rel (%p273_p9) target bundleno = 6368 (0x18e0), region = 52  ;;  %s2357_s10 = smov (!%p273_p9), 16  }
   0xf   : > { %s305_s20 = sand.u32 (!%p273_p9), 1, %s2344_s28   ;;  %s1913_s23 = scalar_lea.hbm (!%p273_p9), %s3200_s8, %s2425_s9 }
  0x10   : > { %s306_s26 = scalar_lea.vmem (!%p273_p9), [#allocation2], %s305_s20  ;;  %s1905_s13 = scalar_lea.sflag (!%p273_p9), [#allocation3], %s305_s20 }
  0x13   : > { %s2454_s17 = scalar_select %p307_p10, %s2425_s9, 1  ;;  %vm320_vm0 = vcmask 261120   ;;  %v2354_v2 = vmov 32.0   ;;  %v357_v14 = vld [vmem:[%s3195_s3 + $0x18] sm:$0xff]  ;;  %v356_v17 = vld [vmem:[%s3195_s3 + $0x10] sm:$0xff]  ;;  %v355_v20 = vld [vmem:[%s3195_s3 + $0x8] sm:$0xff] }
  0x14   : > { %2240 = vrcp.f32 %v2354_v2  ;;  %v1990_v15 = vld [vmem:[%s3195_s3 + $0x98] sm:$0xff]  ;;  %375 = vmatpush.msra.mxu0 %v357_v14  ;;  %v1989_v18 = vld [vmem:[%s3195_s3 + $0x90] sm:$0xff]  ;;  %v1988_v21 = vld [vmem:[%s3195_s3 + $0x88] sm:$0xff]  ;;  %vm440_vm5 = vcmask 64512   ;;  %vm937_vm7 = vcmask 130048   ;;  %vm939_vm8 = vcmask 195584  }
  0x15   : > { %s1985_s18 = sshll.u32 %s2454_s17, 3  ;;  %v1995_v16 = vld [vmem:[%s3195_s3 + $0x118] sm:$0xff]  ;;  %402 = vmatpush.msra.mxu1 %v1990_v15  ;;  %v1994_v19 = vld [vmem:[%s3195_s3 + $0x110] sm:$0xff]  ;;  %v1993_v22 = vld [vmem:[%s3195_s3 + $0x108] sm:$0xff]  ;;  %s309_s12 = scalar_lea.vmem %s3192_s0, %s2454_s17  ;;  %vm1047_vm12 = vcmask 523264  }
  0x16   : > { %s313_s21 = scalar_lea.vmem %s3193_s1, %s1985_s18  ;;  %429 = vmatpush.msra.mxu2 %v1995_v16  ;;  %376 = vmatpush.msra.mxu0 %v356_v17  ;;  %v354_v23 = vld [vmem:[%s3195_s3] sm:$0xff]  ;;  %v2003_v26 = vld [vmem:[%s3195_s3 + $0x38] sm:$0xff]  ;;  %v2002_v29 = vld [vmem:[%s3195_s3 + $0x30] sm:$0xff]  ;;  %s1917_s17 = sshll.u32 %s1913_s23, 4  ;;  %s1918_s17 = int_to_ptr.hbm [resolvable:$true] %s1917_s17 }
  0x17   : > { %v314_v0 = vld [vmem:[%s313_s21] sm:$0xff]  ;;  %403 = vmatpush.msra.mxu1 %v1989_v18  ;;  %v2008_v27 = vld [vmem:[%s3195_s3 + $0xb8] sm:$0xff]  ;;  %v2007_v30 = vld [vmem:[%s3195_s3 + $0xb0] sm:$0xff]  ;;  %s2358_s21 = smov 24   ;;  %s2304_s18 = sshra.s32 %s1918_s17, 4  ;;  %s2305_s18 = int_to_ptr.hbm [resolvable:$true] %s2304_s18 }
  0x18   : > { %v321_v1 = vsel %vm320_vm0, %v314_v0, 0.0  ;;  %430 = vmatpush.msra.mxu2 %v1994_v19  ;;  %377 = vmatpush.msra.mxu0 %v355_v20  ;;  %v1987_v24 = vld [vmem:[%s3195_s3 + $0x80] sm:$0xff]  ;;  %v2013_v28 = vld [vmem:[%s3195_s3 + $0x138] sm:$0xff]  ;;  %v2012_v31 = vld [vmem:[%s3195_s3 + $0x130] sm:$0xff]  ;;  %p2311_p0 = scmp.lt.s32.totalorder %s2305_s18, %s3200_s8 }
  0x19   : > { %322 = vadd.xlane.f32.xlu0 %v321_v1  ;;  %404 = vmatpush.msra.mxu1 %v1988_v21  ;;  %v1992_v25 = vld [vmem:[%s3195_s3 + $0x100] sm:$0xff]  ;;  %v2001_v33 = vld [vmem:[%s3195_s3 + $0x28] sm:$0xff]  ;;  %v2021_v53 = vld [vmem:[%s3195_s3 + $0x58] sm:$0xff]  ;;  %v2355_v21 = vmov -1e+09  }
  0x1a   : > { %v2241_v3 = vpop.eup %2240  ;;  %431 = vmatpush.msra.mxu2 %v1993_v22  ;;  %378 = vmatpush.msra.mxu0 %v354_v23  ;;  %v2006_v34 = vld [vmem:[%s3195_s3 + $0xa8] sm:$0xff]  ;;  %v2000_v37 = vld [vmem:[%s3195_s3 + $0x20] sm:$0xff]  ;;  %v2026_v54 = vld [vmem:[%s3195_s3 + $0xd8] sm:$0xff] }
  0x1b   : > { %v325_v4 = vmul.f32 32.0, %v2241_v3  ;;  %vm329_vm1 = vweird.f32 %v2241_v3  ;;  %405 = vmatpush.msra.mxu1 %v1987_v24  ;;  %v2011_v36 = vld [vmem:[%s3195_s3 + $0x128] sm:$0xff]  ;;  %v2005_v38 = vld [vmem:[%s3195_s3 + $0xa0] sm:$0xff]  ;;  %v2020_v55 = vld [vmem:[%s3195_s3 + $0x50] sm:$0xff] }
  0x1c   : > { %432 = vmatpush.msra.mxu2 %v1992_v25  ;;  %520 = vmatpush.msrb.mxu0 %v2003_v26  ;;  %v2010_v40 = vld [vmem:[%s3195_s3 + $0x120] sm:$0xff]  ;;  %v2025_v56 = vld [vmem:[%s3195_s3 + $0xd0] sm:$0xff]  ;;  %v2019_v57 = vld [vmem:[%s3195_s3 + $0x48] sm:$0xff] }
  0x1d   : > { %v326_v5 = vsub.f32 1.0, %v325_v4  ;;  %547 = vmatpush.msrb.mxu1 %v2008_v27  ;;  %v2200_v47 = vld [vmem:[%s3194_s2] ss:$0 sm:$0xff]  ;;  %v2201_v49 = vld [vmem:[%s3194_s2 + $0x1] ss:$0 sm:$0xff]  ;;  %v2024_v58 = vld [vmem:[%s3195_s3 + $0xc8] sm:$0xff] }
  0x1e   : > { %574 = vmatpush.msrb.mxu2 %v2013_v28  ;;  %521 = vmatpush.msrb.mxu0 %v2002_v29  ;;  %v2018_v59 = vld [vmem:[%s3195_s3 + $0x40] sm:$0xff]  ;;  %v2039_v61 = vld [vmem:[%s3195_s3 + $0x78] sm:$0xff]  ;;  %v2038_v62 = vld [vmem:[%s3195_s3 + $0x70] sm:$0xff] }
  0x1f   : > { %v327_v6 = vmul.f32 %v2241_v3, %v326_v5  ;;  %548 = vmatpush.msrb.mxu1 %v2007_v30  ;;  %v2023_v60 = vld [vmem:[%s3195_s3 + $0xc0] sm:$0xff]  ;;  %v2037_v63 = vld [vmem:[%s3195_s3 + $0x68] sm:$0xff] }
  0x20   : > { %575 = vmatpush.msrb.mxu2 %v2012_v31  ;;  %522 = vmatpush.msrb.mxu0 %v2001_v33  ;;  %v2203_v1 = vld [vmem:[%s3194_s2 + $0x6] ss:$0 sm:$0xff]  ;;  %v2202_v2 = vld [vmem:[%s3194_s2 + $0x2] ss:$0 sm:$0xff]  ;;  %v2207_v14 = vld [vmem:[%s3194_s2 + $0xb] ss:$0 sm:$0xff] }
  0x21   : > { %v328_v7 = vadd.f32 %v2241_v3, %v327_v6  ;;  %549 = vmatpush.msrb.mxu1 %v2006_v34  ;;  %v2209_v17 = vld [vmem:[%s3194_s2 + $0x8] ss:$0 sm:$0xff]  ;;  %v315_v20 = vld [vmem:[%s309_s12] sm:$0x1]  ;;  %s1915_s12 = sshll.u32 %s306_s26, 4  ;;  %s1916_s12 = int_to_ptr.vmem [resolvable:$true] %s1915_s12 }
  0x22   : > { %576 = vmatpush.msrb.mxu2 %v2011_v36  ;;  %523 = vmatpush.msrb.mxu0 %v2000_v37  ;;  %vm316_vm6 = vcmp.gt.f32.partialorder %v315_v20, 0.0  ;;  %v2030_v36 = vld [vmem:[%s3195_s3 + $0x150] sm:$0xff]  ;;  %v2205_v37 = vld [vmem:[%s3194_s2 + $0x3] ss:$0 sm:$0xff] }
  0x23   : > { %v2461_v8 = vsel %vm329_vm1, %v2241_v3, %v328_v7  ;;  %550 = vmatpush.msrb.mxu1 %v2005_v38  ;;  %v2204_v7 = vld [vmem:[%s3194_s2 + $0xa] ss:$0 sm:$0xff]  ;;  %v317_v22 = vsel %vm316_vm6, 0.0, %v2355_v21 }
  0x24   : > { %577 = vmatpush.msrb.mxu2 %v2010_v40  ;;  %v2631_v23 = vperm.slane %v317_v22, 0  ;;  %v2029_v38 = vld [vmem:[%s3195_s3 + $0x148] sm:$0xff]  ;;  %v2028_v40 = vld [vmem:[%s3195_s3 + $0x140] sm:$0xff] }
  0x8c   : > { %v323_v9 = vpop.xlane.xlu0 %322 }
  0x8d   : > { %v331_v10 = vmul.f32 %v2461_v8, %v323_v9  ;;  %v2206_v9 = vld [vmem:[%s3194_s2 + $0x7] ss:$0 sm:$0xff] }
  0x8f   : > { %v2464_v11 = vsub.f32 %v314_v0, %v331_v10  ;;  %v2036_v0 = vld [vmem:[%s3195_s3 + $0x60] sm:$0xff] }
  0x91   : > { %v333_v12 = vmul.f32 %v2464_v11, %v2464_v11 }
  0x93   : > { %v334_v13 = vsel %vm320_vm0, %v333_v12, 0.0 }
  0x94   : > { %335 = vadd.xlane.f32.xlu0 %v334_v13 }
 0x107   : > { %v336_v32 = vpop.xlane.xlu0 %335 }
 0x108   : > { %v337_v35 = vmul.f32 %v336_v32, %v2461_v8 }
 0x10a   : > { %v338_v39 = vadd.f32 1e-12, %v337_v35  ;;  %v2031_v35 = vld [vmem:[%s3195_s3 + $0x158] sm:$0xff] }
 0x10c   : > { %2242 = vrsqrt.f32 %v338_v39  ;;  %vm345_vm3 = vweird.f32 %v338_v39 }
 0x112   : > { %v2243_v41 = vpop.eup %2242 }
 0x113   : > { %v340_v42 = vmul.f32 %v2243_v41, %v338_v39  ;;  %vm346_vm2 = vweird.f32 %v2243_v41 }
 0x114   : > { %vm347_vm4 = vmor %vm345_vm3, %vm346_vm2 }
 0x115   : > { %v341_v43 = vmul.f32 %v2243_v41, %v340_v42  ;;  %v2044_v42 = vld [vmem:[%s3195_s3 + $0xf8] sm:$0xff] }
 0x117   : > { %v342_v44 = vmul.f32 0.5, %v341_v43  ;;  %v2043_v43 = vld [vmem:[%s3195_s3 + $0xf0] sm:$0xff] }
 0x119   : > { %v343_v45 = vsub.f32 1.5, %v342_v44  ;;  %v2042_v44 = vld [vmem:[%s3195_s3 + $0xe8] sm:$0xff] }
 0x11b   : > { %v344_v46 = vmul.f32 %v2243_v41, %v343_v45  ;;  %v2041_v45 = vld [vmem:[%s3195_s3 + $0xe0] sm:$0xff] }
 0x11d   : > { %v348_v48 = vsel %vm347_vm4, %v2243_v41, %v344_v46 }
 0x11e   : > { %v349_v50 = vmul.f32 %v348_v48, %v2464_v11 }
 0x120   : > { %v351_v51 = vmul.f32 %v2200_v47, %v349_v50  ;;  %v2211_v50 = vld [vmem:[%s3194_s2 + $0xc] ss:$0 sm:$0xff] }
 0x122   : > { %v2549_v52 = vadd.f32 %v2201_v49, %v351_v51 }
 0x124   : > { %1986 = vmatmul.msk.f32.vlgmr.msra.gmra.mxu0 %vm320_vm0, %v2549_v52  ;;  %1991 = vmatmul.msk.f32.vlgmr.msra.gmra.mxu1 %vm320_vm0, %v2549_v52 }
 0x125   : > { %1996 = vmatmul.msk.f32.vlgmr.msra.gmra.mxu2 %vm320_vm0, %v2549_v52  ;;  %661 = vmatpush.msra.mxu1 %v2021_v53 }
 0x126   : > { %688 = vmatpush.msra.mxu2 %v2026_v54  ;;  %v2212_v54 = vld [vmem:[%s3194_s2 + $0x9] ss:$0 sm:$0xff] }
 0x127   : > { %662 = vmatpush.msra.mxu1 %v2020_v55 }
 0x128   : > { %689 = vmatpush.msra.mxu2 %v2025_v56 }
 0x129   : > { %663 = vmatpush.msra.mxu1 %v2019_v57 }
 0x12a   : > { %690 = vmatpush.msra.mxu2 %v2024_v58 }
 0x12b   : > { %664 = vmatpush.msra.mxu1 %v2018_v59 }
 0x12c   : > { %2004 = vmatmul.msk.f32.vlgmr.msrb.gmra.mxu0 %vm320_vm0, %v2549_v52  ;;  %2009 = vmatmul.msk.f32.vlgmr.msrb.gmra.mxu1 %vm320_vm0, %v2549_v52 }
 0x12d   : > { %2014 = vmatmul.msk.f32.vlgmr.msrb.gmra.mxu2 %vm320_vm0, %v2549_v52 }
 0x12e   : > { %691 = vmatpush.msra.mxu2 %v2023_v60 }
 0x130   : > { %802 = vmatpush.msrb.mxu2 %v2039_v61 }
 0x132   : > { %803 = vmatpush.msrb.mxu2 %v2038_v62 }
 0x134   : > { %804 = vmatpush.msrb.mxu2 %v2037_v63  ;;  %2022 = vmatmul.msk.f32.vlgmr.msra.gmra.mxu1 %vm320_vm0, %v2549_v52 }
 0x135   : > { %2027 = vmatmul.msk.f32.vlgmr.msra.gmra.mxu2 %vm320_vm0, %v2549_v52 }
 0x136   : > { %805 = vmatpush.msrb.mxu2 %v2036_v0 }
 0x13d   : > { %2040 = vmatmul.msk.f32.vlgmr.msrb.gmra.mxu2 %vm320_vm0, %v2549_v52 }
 0x1a1   : > { %v407_v3 = vpop.f32.mrf.mxu1  ;;  %v380_v4 = vpop.f32.mrf.mxu0 }
 0x1a2   : > { %v408_v5 = vadd.f32 %v2203_v1, %v407_v3  ;;  %v381_v6 = vadd.f32 %v2202_v2, %v380_v4  ;;  %v2049_v1 = vld [vmem:[%s3195_s3 + $0x178] sm:$0xff]  ;;  %v2048_v2 = vld [vmem:[%s3195_s3 + $0x170] sm:$0xff]  ;;  %v2208_v3 = vld [vmem:[%s3194_s2 + $0x4] ss:$0 sm:$0xff] }
 0x1a3   : > { %v2047_v4 = vld [vmem:[%s3195_s3 + $0x168] sm:$0xff] }
 0x1a4   : > { %1997 = vmatpush.xpose.msk.msra.mxu3 %vm440_vm5, %v408_v5 }
 0x1a7   : > { %1998 = vmatmul.msk.f32.vlgmr.msra.gmra.mxu3 %vm440_vm5, %v381_v6  ;;  %v2046_v6 = vld [vmem:[%s3195_s3 + $0x160] sm:$0xff] }
 0x1a8   : > { %v434_v10 = vpop.f32.mrf.mxu2 }
 0x1a9   : > { %v435_v11 = vadd.f32 %v2204_v7, %v434_v10  ;;  %v552_v12 = vpop.f32.mrf.mxu1  ;;  %v525_v39 = vpop.f32.mrf.mxu0 }
 0x1aa   : > { %v553_v13 = vadd.f32 %v2206_v9, %v552_v12  ;;  %v526_v41 = vadd.f32 %v2205_v37, %v525_v39 }
 0x1ab   : > { %496 = vmatpush.msrb.mxu3 %v435_v11 }
 0x1ad   : > { %2015 = vmatpush.xpose.msk.msra.mxu3 %vm440_vm5, %v553_v13  ;;  %v2213_v13 = vld [vmem:[%s3194_s2 + $0xd] ss:$0 sm:$0xff] }
 0x1b0   : > { %v579_v15 = vpop.f32.mrf.mxu2 }
 0x1b1   : > { %v580_v16 = vadd.f32 %v2207_v14, %v579_v15  ;;  %v666_v5 = vpop.f32.mrf.mxu1 }
 0x1b2   : > { %v667_v7 = vadd.f32 %v2208_v3, %v666_v5 }
 0x1b3   : > { %637 = vmatpush.msra.mxu0 %v580_v16 }
 0x1b8   : > { %v693_v18 = vpop.f32.mrf.mxu2 }
 0x1b9   : > { %v694_v19 = vadd.f32 %v2209_v17, %v693_v18 }
 0x1bb   : > { %2033 = vmatpush.xpose.msk.msrb.mxu0 %vm440_vm5, %v694_v19 }
 0x22a   : > { %v464_v24 = vpop.f32.mrf.mxu3 }
 0x22b   : > { %v465_v25 = vadd.f32 %v464_v24, %v2631_v23 }
 0x22d   : > { %v467_v26 = vsel %vm440_vm5, %v465_v25, -inf }
 0x22e   : > { %468 = vmax.xlane.f32.xlu1 %v467_v26  ;;  %v807_v26 = vpop.f32.mrf.mxu2 }
 0x2a1   : > { %v469_v27 = vpop.xlane.xlu1 %468 }
 0x2a2   : > { %v470_v28 = vsub.f32 %v465_v25, %v469_v27  ;;  %v2210_v25 = vld [vmem:[%s3194_s2 + $0x5] ss:$0 sm:$0xff] }
 0x2a3   : > { %v808_v27 = vadd.f32 %v2210_v25, %v807_v26  ;;  %v1037_v25 = vld [vmem:[%s3198_s6] sm:$0xff]  ;;  %v2217_v26 = vld [vmem:[%s3194_s2 + $0x11] ss:$0 sm:$0xff] }
 0x2a4   : > { %v471_v29 = vmul.f32 1.442695, %v470_v28 }
 0x2a6   : > { %2244 = vpow2.f32 %v471_v29 }
 0x2ac   : > { %v2245_v30 = vpop.eup %2244 }
 0x2ad   : > { %v473_v31 = vsel %vm440_vm5, %v2245_v30, 0.0 }
 0x2ae   : > { %474 = vadd.xlane.f32.xlu1 %v473_v31 }
 0x321   : > { %v475_v32 = vpop.xlane.xlu1 %474 }
 0x322   : > { %2246 = vrcp.f32 %v475_v32 }
 0x328   : > { %v2247_v33 = vpop.eup %2246 }
 0x329   : > { %v477_v34 = vmul.f32 %v2247_v33, %v2245_v30 }
 0x32b   : > { %1999 = vmatmul.msk.f32.vlgmr.msrb.gmra.mxu3 %vm440_vm5, %v477_v34 }
 0x32c   : > { %715 = vmatpush.msrb.mxu3 %v2031_v35 }
 0x32e   : > { %716 = vmatpush.msrb.mxu3 %v2030_v36 }
 0x330   : > { %717 = vmatpush.msrb.mxu3 %v2029_v38 }
 0x332   : > { %718 = vmatpush.msrb.mxu3 %v2028_v40  ;;  %v944_v40 = vld [vmem:[%s3196_s4 + $0x18] sm:$0xff] }
 0x333   : > { %2016 = vmatmul.msk.f32.vlgmr.msra.gmra.mxu3 %vm440_vm5, %v526_v41  ;;  %v943_v41 = vld [vmem:[%s3196_s4 + $0x10] sm:$0xff] }
 0x334   : > { %829 = vmatpush.msra.mxu3 %v2044_v42  ;;  %v942_v42 = vld [vmem:[%s3196_s4 + $0x8] sm:$0xff] }
 0x336   : > { %830 = vmatpush.msra.mxu3 %v2043_v43 }
 0x338   : > { %831 = vmatpush.msra.mxu3 %v2042_v44  ;;  %v941_v44 = vld [vmem:[%s3196_s4] sm:$0xff] }
 0x33a   : > { %832 = vmatpush.msra.mxu3 %v2041_v45 }
 0x33b   : > { %2032 = vmatmul.msk.f32.vlgmr.msrb.gmra.mxu3 %vm320_vm0, %v2549_v52 }
 0x33c   : > { %962 = vmatpush.msrb.mxu3 %v944_v40 }
 0x33e   : > { %963 = vmatpush.msrb.mxu3 %v943_v41 }
 0x340   : > { %964 = vmatpush.msrb.mxu3 %v942_v42 }
 0x342   : > { %965 = vmatpush.msrb.mxu3 %v941_v44 }
 0x343   : > { %2045 = vmatmul.msk.f32.vlgmr.msra.gmra.mxu3 %vm320_vm0, %v2549_v52 }
 0x3ae   : > { %v2669_v46 = vpop.f32.mrf.mxu3 }
 0x3b6   : > { %v605_v47 = vpop.f32.mrf.mxu3 }
 0x3b7   : > { %v606_v48 = vadd.f32 %v605_v47, %v2631_v23 }
 0x3b9   : > { %v608_v49 = vsel %vm440_vm5, %v606_v48, -inf }
 0x3ba   : > { %609 = vmax.xlane.f32.xlu2 %v608_v49 }
 0x3be   : > { %v720_v51 = vpop.f32.mrf.mxu3 }
 0x3bf   : > { %v721_v53 = vadd.f32 %v2211_v50, %v720_v51 }
 0x3c1   : > { %778 = vmatpush.msrb.mxu1 %v721_v53  ;;  %v2214_v53 = vld [vmem:[%s3194_s2 + $0xe] ss:$0 sm:$0xff] }
 0x3c6   : > { %v834_v55 = vpop.f32.mrf.mxu3 }
 0x3c7   : > { %v835_v56 = vadd.f32 %v2212_v54, %v834_v55 }
 0x3c9   : > { %2051 = vmatpush.xpose.msk.msra.mxu1 %vm440_vm5, %v835_v56 }
 0x42d   : > { %v610_v57 = vpop.xlane.xlu2 %609 }
 0x42e   : > { %v611_v58 = vsub.f32 %v606_v48, %v610_v57 }
 0x430   : > { %v612_v59 = vmul.f32 1.442695, %v611_v58 }
 0x432   : > { %2248 = vpow2.f32 %v612_v59 }
 0x438   : > { %v2249_v60 = vpop.eup %2248 }
 0x439   : > { %v614_v61 = vsel %vm440_vm5, %v2249_v60, 0.0 }
 0x43a   : > { %615 = vadd.xlane.f32.xlu2 %v614_v61 }
 0x4ad   : > { %v616_v62 = vpop.xlane.xlu2 %615 }
 0x4ae   : > { %2250 = vrcp.f32 %v616_v62  ;;  %v1002_v62 = vld [vmem:[%s3197_s5 + $0x18] sm:$0xff] }
 0x4b4   : > { %v2251_v63 = vpop.eup %2250 }
 0x4b5   : > { %v618_v0 = vmul.f32 %v2251_v63, %v2249_v60  ;;  %v1000_v63 = vld [vmem:[%s3197_s5 + $0x8] sm:$0xff] }
 0x4b7   : > { %2017 = vmatmul.msk.f32.vlgmr.msra.gmra.mxu0 %vm440_vm5, %v618_v0  ;;  %v999_v0 = vld [vmem:[%s3197_s5] sm:$0xff] }
 0x4b8   : > { %856 = vmatpush.msra.mxu0 %v2049_v1 }
 0x4ba   : > { %857 = vmatpush.msra.mxu0 %v2048_v2 }
 0x4bc   : > { %858 = vmatpush.msra.mxu0 %v2047_v4 }
 0x4be   : > { %859 = vmatpush.msra.mxu0 %v2046_v6 }
 0x4bf   : > { %2034 = vmatmul.msk.f32.vlgmr.msrb.gmra.mxu0 %vm440_vm5, %v667_v7 }
 0x4c0   : > { %1020 = vmatpush.msrb.mxu0 %v1002_v62  ;;  %v2062_v62 = vld [vmem:[%s3195_s3 + $0x200] sm:$0xff] }
 0x4c7   : > { %2050 = vmatmul.msk.f32.vlgmr.msra.gmra.mxu0 %vm320_vm0, %v2549_v52 }
 0x534   : > { %v639_v9 = vpop.f32.mrf.mxu0 }
 0x53c   : > { %v746_v10 = vpop.f32.mrf.mxu0 }
 0x53d   : > { %v747_v11 = vadd.f32 %v746_v10, %v2631_v23 }
 0x53f   : > { %v749_v12 = vsel %vm440_vm5, %v747_v11, -inf }
 0x540   : > { %750 = vmax.xlane.f32.xlu0 %v749_v12 }
 0x544   : > { %v861_v14 = vpop.f32.mrf.mxu0 }
 0x545   : > { %v862_v15 = vadd.f32 %v2213_v13, %v861_v14  ;;  %v2216_v14 = vld [vmem:[%s3194_s2 + $0x10] ss:$0 sm:$0xff] }
 0x547   : > { %919 = vmatpush.msra.mxu2 %v862_v15 }
 0x5b3   : > { %v751_v16 = vpop.xlane.xlu0 %750 }
 0x5b4   : > { %v752_v17 = vsub.f32 %v747_v11, %v751_v16  ;;  %v2215_v11 = vld [vmem:[%s3194_s2 + $0xf] ss:$0 sm:$0xff] }
 0x5b6   : > { %v753_v18 = vmul.f32 1.442695, %v752_v17  ;;  %v1044_v17 = vld [vmem:[%s3198_s6 + $0x38] sm:$0xff] }
 0x5b8   : > { %2252 = vpow2.f32 %v753_v18  ;;  %v1043_v18 = vld [vmem:[%s3198_s6 + $0x30] sm:$0xff] }
 0x5be   : > { %v2253_v19 = vpop.eup %2252 }
 0x5bf   : > { %v755_v20 = vsel %vm440_vm5, %v2253_v19, 0.0 }
 0x5c0   : > { %756 = vadd.xlane.f32.xlu1 %v755_v20  ;;  %v1041_v20 = vld [vmem:[%s3198_s6 + $0x20] sm:$0xff] }
 0x5d9   : > { %925 = vrot.lane.b32.xlu1 %v639_v9, %s2356_s24 }
 0x633   : > { %v757_v21 = vpop.xlane.xlu1 %756 }
 0x634   : > { %2254 = vrcp.f32 %v757_v21  ;;  %v1040_v21 = vld [vmem:[%s3198_s6 + $0x18] sm:$0xff] }
 0x63a   : > { %v2255_v22 = vpop.eup %2254 }
 0x63b   : > { %v759_v24 = vmul.f32 %v2255_v22, %v2253_v19  ;;  %v1042_v19 = vld [vmem:[%s3198_s6 + $0x28] sm:$0xff]  ;;  %v1039_v22 = vld [vmem:[%s3198_s6 + $0x10] sm:$0xff] }
 0x63d   : > { %2035 = vmatmul.msk.f32.vlgmr.msrb.gmra.mxu1 %vm440_vm5, %v759_v24  ;;  %v1038_v24 = vld [vmem:[%s3198_s6 + $0x8] sm:$0xff] }
 0x63e   : > { %1059 = vmatpush.msrb.mxu1 %v1044_v17 }
 0x640   : > { %1060 = vmatpush.msrb.mxu1 %v1043_v18  ;;  %v2219_v18 = vld [vmem:[%s3194_s2 + $0x13] ss:$0 sm:$0xff] }
 0x642   : > { %1061 = vmatpush.msrb.mxu1 %v1042_v19 }
 0x644   : > { %1062 = vmatpush.msrb.mxu1 %v1041_v20  ;;  %v2220_v20 = vld [vmem:[%s3194_s2 + $0x14] ss:$0 sm:$0xff] }
 0x645   : > { %2052 = vmatmul.msk.f32.vlgmr.msra.gmra.mxu1 %vm440_vm5, %v808_v27 }
 0x646   : > { %1063 = vmatpush.msrb.mxu1 %v1040_v21 }
 0x648   : > { %1064 = vmatpush.msrb.mxu1 %v1039_v22 }
 0x64a   : > { %1065 = vmatpush.msrb.mxu1 %v1038_v24 }
 0x64b   : > { %v926_v45 = vpop.permute.xlu1 %925 }
 0x64c   : > { %v936_v48 = vsel %vm440_vm5, %v2669_v46, %v926_v45  ;;  %1066 = vmatpush.msrb.mxu1 %v1037_v25  ;;  %v2221_v25 = vld [vmem:[%s3194_s2 + $0x1d] ss:$0 sm:$0xff] }
 0x6ba   : > { %v780_v28 = vpop.f32.mrf.mxu1 }
 0x6c2   : > { %v887_v29 = vpop.f32.mrf.mxu1 }
 0x6c3   : > { %v888_v30 = vadd.f32 %v887_v29, %v2631_v23 }
 0x6c5   : > { %v890_v31 = vsel %vm440_vm5, %v888_v30, -inf }
 0x6c6   : > { %891 = vmax.xlane.f32.xlu2 %v890_v31 }
 0x6de   : > { %929 = vrot.lane.b32.xlu2 %v780_v28, %s2357_s10 }
 0x739   : > { %v892_v32 = vpop.xlane.xlu2 %891 }
 0x73a   : > { %v893_v33 = vsub.f32 %v888_v30, %v892_v32 }
 0x73c   : > { %v894_v34 = vmul.f32 1.442695, %v893_v33 }
 0x73e   : > { %2256 = vpow2.f32 %v894_v34 }
 0x741   : > { %v930_v47 = vpop.permute.xlu2 %929 }
 0x742   : > { %v938_v49 = vsel %vm937_vm7, %v936_v48, %v930_v47 }
 0x744   : > { %v2257_v35 = vpop.eup %2256 }
 0x745   : > { %v896_v36 = vsel %vm440_vm5, %v2257_v35, 0.0 }
 0x746   : > { %897 = vadd.xlane.f32.xlu0 %v896_v36 }
 0x7b9   : > { %v898_v37 = vpop.xlane.xlu0 %897 }
 0x7ba   : > { %2258 = vrcp.f32 %v898_v37 }
 0x7c0   : > { %v2259_v38 = vpop.eup %2258 }
 0x7c1   : > { %v900_v39 = vmul.f32 %v2259_v38, %v2257_v35  ;;  %v2218_v38 = vld [vmem:[%s3194_s2 + $0x12] ss:$0 sm:$0xff] }
 0x7c3   : > { %2053 = vmatmul.msk.f32.vlgmr.msra.gmra.mxu2 %vm440_vm5, %v900_v39 }
 0x846   : > { %v921_v43 = vpop.f32.mrf.mxu2 }
 0x847   : > { %933 = vrot.lane.b32.xlu0 %v921_v43, %s2358_s21 }
 0x8b9   : > { %v934_v50 = vpop.permute.xlu0 %933 }
 0x8ba   : > { %v940_v51 = vsel %vm939_vm8, %v938_v49, %v934_v50  ;;  %v2060_v49 = vld [vmem:[%s3195_s3 + $0x198] sm:$0xff] }
 0x8bb   : > { %2054 = vmatmul.msk.f32.vlgmr.msrb.gmra.mxu3 %vm320_vm0, %v940_v51  ;;  %v2065_v50 = vld [vmem:[%s3195_s3 + $0x218] sm:$0xff]  ;;  %1122 = vmatpush.msrb.mxu2 %v2060_v49  ;;  %v2111_v49 = vld [vmem:[%s3195_s3 + $0x1e0] sm:$0xff] }
 0x8bc   : > { %v2070_v51 = vld [vmem:[%s3195_s3 + $0x298] sm:$0xff]  ;;  %1149 = vmatpush.msra.mxu3 %v2065_v50 }
 0x93e   : > { %v967_v54 = vpop.f32.mrf.mxu3 }
 0x93f   : > { %v968_v55 = vadd.f32 %v2214_v53, %v967_v54  ;;  %v2083_v53 = vld [vmem:[%s3195_s3 + $0x238] sm:$0xff]  ;;  %v2059_v54 = vld [vmem:[%s3195_s3 + $0x190] sm:$0xff] }
 0x940   : > { %1290 = vmatpush.msra.mxu1 %v2083_v53  ;;  %1123 = vmatpush.msrb.mxu2 %v2059_v54  ;;  %v2227_v54 = vld [vmem:[%s3194_s2 + $0x1e] ss:$0 sm:$0xff] }
 0x941   : > { %v970_v56 = vadd.f32 %v968_v55, %v2549_v52  ;;  %v1001_v52 = vld [vmem:[%s3197_s5 + $0x10] sm:$0xff] }
 0x942   : > { %1021 = vmatpush.msrb.mxu0 %v1001_v52  ;;  %v2064_v55 = vld [vmem:[%s3195_s3 + $0x210] sm:$0xff]  ;;  %v2067_v52 = vld [vmem:[%s3195_s3 + $0x280] sm:$0xff] }
 0x943   : > { %v973_v57 = vsel %vm320_vm0, %v970_v56, 0.0  ;;  %1150 = vmatpush.msra.mxu3 %v2064_v55 }
 0x944   : > { %974 = vadd.xlane.f32.xlu2 %v973_v57  ;;  %1022 = vmatpush.msrb.mxu0 %v1000_v63  ;;  %v2082_v57 = vld [vmem:[%s3195_s3 + $0x230] sm:$0xff]  ;;  %v2080_v63 = vld [vmem:[%s3195_s3 + $0x220] sm:$0xff] }
 0x945   : > { %1291 = vmatpush.msra.mxu1 %v2082_v57  ;;  %v2228_v57 = vld [vmem:[%s3194_s2 + $0x1b] ss:$0 sm:$0xff] }
 0x946   : > { %1023 = vmatpush.msrb.mxu0 %v999_v0  ;;  %v2078_v0 = vld [vmem:[%s3195_s3 + $0x1b8] sm:$0xff] }
 0x948   : > { %1176 = vmatpush.msra.mxu0 %v2070_v51 }
 0x9b7   : > { %v975_v58 = vpop.xlane.xlu2 %974 }
 0x9b8   : > { %v976_v46 = vmul.f32 %v975_v58, %v2461_v8  ;;  %v2058_v58 = vld [vmem:[%s3195_s3 + $0x188] sm:$0xff] }
 0x9b9   : > { %1124 = vmatpush.msrb.mxu2 %v2058_v58 }
 0x9ba   : > { %v977_v59 = vsub.f32 %v970_v56, %v976_v46  ;;  %v2069_v56 = vld [vmem:[%s3195_s3 + $0x290] sm:$0xff]  ;;  %v2063_v46 = vld [vmem:[%s3195_s3 + $0x208] sm:$0xff] }
 0x9bb   : > { %1177 = vmatpush.msra.mxu0 %v2069_v56  ;;  %1151 = vmatpush.msra.mxu3 %v2063_v46 }
 0x9bc   : > { %v978_v60 = vmul.f32 %v977_v59, %v977_v59 }
 0x9bd   : > { %1152 = vmatpush.msra.mxu3 %v2062_v62 }
 0x9be   : > { %v979_v61 = vsel %vm320_vm0, %v978_v60, 0.0  ;;  %v2081_v60 = vld [vmem:[%s3195_s3 + $0x228] sm:$0xff] }
 0x9bf   : > { %980 = vadd.xlane.f32.xlu1 %v979_v61  ;;  %v2057_v61 = vld [vmem:[%s3195_s3 + $0x180] sm:$0xff]  ;;  %1292 = vmatpush.msra.mxu1 %v2081_v60 }
 0x9c0   : > { %1125 = vmatpush.msrb.mxu2 %v2057_v61 }
 0x9c1   : > { %1293 = vmatpush.msra.mxu1 %v2080_v63 }
 0xa32   : > { %v981_v1 = vpop.xlane.xlu1 %980 }
 0xa33   : > { %v982_v2 = vmul.f32 %v981_v1, %v2461_v8  ;;  %v2096_v1 = vld [vmem:[%s3195_s3 + $0x1d8] sm:$0xff] }
 0xa35   : > { %v983_v3 = vadd.f32 1e-12, %v982_v2  ;;  %v2077_v2 = vld [vmem:[%s3195_s3 + $0x1b0] sm:$0xff] }
 0xa37   : > { %2260 = vrsqrt.f32 %v983_v3  ;;  %vm990_vm10 = vweird.f32 %v983_v3 }
 0xa3d   : > { %v2261_v4 = vpop.eup %2260 }
 0xa3e   : > { %v985_v5 = vmul.f32 %v2261_v4, %v983_v3  ;;  %vm991_vm9 = vweird.f32 %v2261_v4  ;;  %v2095_v3 = vld [vmem:[%s3195_s3 + $0x1d0] sm:$0xff] }
 0xa3f   : > { %vm992_vm11 = vmor %vm990_vm10, %vm991_vm9 }
 0xa40   : > { %v986_v6 = vmul.f32 %v2261_v4, %v985_v5  ;;  %v2076_v5 = vld [vmem:[%s3195_s3 + $0x1a8] sm:$0xff] }
 0xa42   : > { %v987_v7 = vmul.f32 0.5, %v986_v6  ;;  %v2094_v6 = vld [vmem:[%s3195_s3 + $0x1c8] sm:$0xff] }
 0xa44   : > { %v988_v9 = vsub.f32 1.5, %v987_v7 }
 0xa46   : > { %v989_v10 = vmul.f32 %v2261_v4, %v988_v9  ;;  %v2075_v9 = vld [vmem:[%s3195_s3 + $0x1a0] sm:$0xff] }
 0xa48   : > { %v993_v12 = vsel %vm992_vm11, %v2261_v4, %v989_v10  ;;  %v2093_v10 = vld [vmem:[%s3195_s3 + $0x1c0] sm:$0xff] }
 0xa49   : > { %v994_v13 = vmul.f32 %v993_v12, %v977_v59  ;;  %v2068_v59 = vld [vmem:[%s3195_s3 + $0x288] sm:$0xff] }
 0xa4a   : > { %1178 = vmatpush.msra.mxu0 %v2068_v59 }
 0xa4b   : > { %v996_v15 = vmul.f32 %v2215_v11, %v994_v13 }
 0xa4c   : > { %1179 = vmatpush.msra.mxu0 %v2067_v52 }
 0xa4d   : > { %v998_v16 = vadd.f32 %v2216_v14, %v996_v15 }
 0xa4f   : > { %2055 = vmatmul.msk.f32.vlgmr.msrb.gmra.mxu0 %vm320_vm0, %v998_v16 }
 0xa50   : > { %1263 = vmatpush.msrb.mxu0 %v2078_v0 }
 0xa52   : > { %1264 = vmatpush.msrb.mxu0 %v2077_v2  ;;  %v2106_v2 = vld [vmem:[%s3195_s3 + $0x2d8] sm:$0xff] }
 0xa54   : > { %1265 = vmatpush.msrb.mxu0 %v2076_v5  ;;  %v2104_v5 = vld [vmem:[%s3195_s3 + $0x2c8] sm:$0xff] }
 0xa56   : > { %1266 = vmatpush.msrb.mxu0 %v2075_v9 }
 0xacc   : > { %v1025_v27 = vpop.f32.mrf.mxu0 }
 0xacd   : > { %v1026_v28 = vadd.f32 %v2217_v26, %v1025_v27  ;;  %v2222_v26 = vld [vmem:[%s3194_s2 + $0x1a] ss:$0 sm:$0xff] }
 0xacf   : > { %v1028_v29 = vmul.f32 %v1026_v28, %v1026_v28 }
 0xad1   : > { %v1029_v30 = vmul.f32 %v1028_v29, %v1026_v28 }
 0xad3   : > { %v1030_v31 = vmul.f32 0.044715, %v1029_v30 }
 0xad5   : > { %v1031_v32 = vadd.f32 %v1030_v31, %v1026_v28  ;;  %v2224_v31 = vld [vmem:[%s3194_s2 + $0x19] ss:$0 sm:$0xff] }
 0xad7   : > { %v1032_v33 = vmul.f32 0.7978846, %v1031_v32  ;;  %v2223_v32 = vld [vmem:[%s3194_s2 + $0x15] ss:$0 sm:$0xff] }
 0xad9   : > { %2262 = vtanh.f32 %v1032_v33 }
 0xadf   : > { %v2263_v34 = vpop.eup %2262 }
 0xae0   : > { %v1034_v35 = vadd.f32 1.0, %v2263_v34 }
 0xae2   : > { %v1035_v36 = vmul.f32 0.5, %v1034_v35 }
 0xae4   : > { %v1036_v37 = vmul.f32 %v1035_v36, %v1026_v28  ;;  %v2088_v36 = vld [vmem:[%s3195_s3 + $0x2b8] sm:$0xff] }
 0xae6   : > { %2056 = vmatmul.msk.f32.vlgmr.msrb.gmra.mxu1 %vm1047_vm12, %v1036_v37 }
 0xae7   : > { %1404 = vmatpush.msrb.mxu1 %v2096_v1 }
 0xae9   : > { %1405 = vmatpush.msrb.mxu1 %v2095_v3  ;;  %v2105_v3 = vld [vmem:[%s3195_s3 + $0x2d0] sm:$0xff] }
 0xaeb   : > { %1406 = vmatpush.msrb.mxu1 %v2094_v6 }
 0xaed   : > { %1407 = vmatpush.msrb.mxu1 %v2093_v10  ;;  %v2119_v10 = vld [vmem:[%s3195_s3 + $0x278] sm:$0xff] }
 0xb63   : > { %v1068_v39 = vpop.f32.mrf.mxu1 }
 0xb64   : > { %v1069_v40 = vadd.f32 %v2218_v38, %v1068_v39  ;;  %v2087_v38 = vld [vmem:[%s3195_s3 + $0x2b0] sm:$0xff]  ;;  %v2086_v39 = vld [vmem:[%s3195_s3 + $0x2a8] sm:$0xff] }
 0xb66   : > { %v1071_v41 = vadd.f32 %v1069_v40, %v998_v16  ;;  %v2085_v40 = vld [vmem:[%s3195_s3 + $0x2a0] sm:$0xff] }
 0xb68   : > { %v1074_v42 = vsel %vm320_vm0, %v1071_v41, 0.0 }
 0xb69   : > { %1075 = vadd.xlane.f32.xlu0 %v1074_v42  ;;  %v2100_v42 = vld [vmem:[%s3195_s3 + $0x250] sm:$0xff] }
 0xbdc   : > { %v1076_v43 = vpop.xlane.xlu0 %1075 }
 0xbdd   : > { %v1077_v44 = vmul.f32 %v1076_v43, %v2461_v8  ;;  %v2099_v43 = vld [vmem:[%s3195_s3 + $0x248] sm:$0xff] }
 0xbdf   : > { %v2795_v45 = vsub.f32 %v1071_v41, %v1077_v44  ;;  %v2101_v41 = vld [vmem:[%s3195_s3 + $0x258] sm:$0xff]  ;;  %v2098_v44 = vld [vmem:[%s3195_s3 + $0x240] sm:$0xff] }
 0xbe1   : > { %v1079_v47 = vmul.f32 %v2795_v45, %v2795_v45 }
 0xbe3   : > { %v1080_v48 = vsel %vm320_vm0, %v1079_v47, 0.0  ;;  %v2113_v47 = vld [vmem:[%s3195_s3 + $0x1f0] sm:$0xff] }
 0xbe4   : > { %1081 = vadd.xlane.f32.xlu2 %v1080_v48  ;;  %v2112_v48 = vld [vmem:[%s3195_s3 + $0x1e8] sm:$0xff] }
 0xc57   : > { %v1082_v4 = vpop.xlane.xlu2 %1081 }
 0xc58   : > { %v1083_v7 = vmul.f32 %v1082_v4, %v2461_v8  ;;  %v2225_v4 = vld [vmem:[%s3194_s2 + $0x16] ss:$0 sm:$0xff] }
 0xc5a   : > { %v1084_v11 = vadd.f32 1e-12, %v1083_v7  ;;  %v2103_v7 = vld [vmem:[%s3195_s3 + $0x2c0] sm:$0xff] }
 0xc5c   : > { %2264 = vrsqrt.f32 %v1084_v11  ;;  %vm1091_vm14 = vweird.f32 %v1084_v11 }
 0xc62   : > { %v2265_v12 = vpop.eup %2264 }
 0xc63   : > { %v1086_v13 = vmul.f32 %v2265_v12, %v1084_v11  ;;  %vm1092_vm13 = vweird.f32 %v2265_v12  ;;  %v2118_v11 = vld [vmem:[%s3195_s3 + $0x270] sm:$0xff] }
 0xc64   : > { %vm1093_vm15 = vmor %vm1091_vm14, %vm1092_vm13 }
 0xc65   : > { %v1087_v14 = vmul.f32 %v2265_v12, %v1086_v13  ;;  %v2116_v13 = vld [vmem:[%s3195_s3 + $0x260] sm:$0xff] }
 0xc67   : > { %v1088_v15 = vmul.f32 0.5, %v1087_v14 }
 0xc69   : > { %v1089_v16 = vsub.f32 1.5, %v1088_v15 }
 0xc6b   : > { %v1090_v17 = vmul.f32 %v2265_v12, %v1089_v16 }
 0xc6d   : > { %v1094_v19 = vsel %vm1093_vm15, %v2265_v12, %v1090_v17  ;;  %v2117_v12 = vld [vmem:[%s3195_s3 + $0x268] sm:$0xff] }
 0xc6e   : > { %v1095_v21 = vmul.f32 %v1094_v19, %v2795_v45  ;;  %v2114_v45 = vld [vmem:[%s3195_s3 + $0x1f8] sm:$0xff] }
 0xc70   : > { %v1097_v22 = vmul.f32 %v2219_v18, %v1095_v21  ;;  %v2230_v18 = vld [vmem:[%s3194_s2 + $0x1f] ss:$0 sm:$0xff]  ;;  %v2231_v21 = vld [vmem:[%s3194_s2 + $0x1c] ss:$0 sm:$0xff] }
 0xc72   : > { %v2880_v24 = vadd.f32 %v2220_v20, %v1097_v22 }
 0xc74   : > { %2061 = vmatmul.msk.f32.vlgmr.msrb.gmra.mxu2 %vm320_vm0, %v2880_v24  ;;  %2066 = vmatmul.msk.f32.vlgmr.msra.gmra.mxu3 %vm320_vm0, %v2880_v24 }
 0xc75   : > { %2071 = vmatmul.msk.f32.vlgmr.msra.gmra.mxu0 %vm320_vm0, %v2880_v24  ;;  %2084 = vmatmul.msk.f32.vlgmr.msra.gmra.mxu1 %vm320_vm0, %v2880_v24 }
 0xc7d   : > { %2079 = vmatmul.msk.f32.vlgmr.msrb.gmra.mxu0 %vm320_vm0, %v2880_v24  ;;  %2097 = vmatmul.msk.f32.vlgmr.msrb.gmra.mxu1 %vm320_vm0, %v2880_v24 }
 0xcf2   : > { %v1181_v27 = vpop.f32.mrf.mxu0  ;;  %v1295_v28 = vpop.f32.mrf.mxu1 }
 0xcf3   : > { %v1182_v29 = vadd.f32 %v2221_v25, %v1181_v27  ;;  %v1296_v30 = vadd.f32 %v2222_v26, %v1295_v28 }
 0xcf5   : > { %1239 = vmatpush.msrb.mxu3 %v1182_v29 }
 0xcf7   : > { %2090 = vmatpush.xpose.msk.msra.mxu3 %vm440_vm5, %v1296_v30  ;;  %v1154_v33 = vpop.f32.mrf.mxu3  ;;  %v1127_v34 = vpop.f32.mrf.mxu2 }
 0xcf8   : > { %v1155_v35 = vadd.f32 %v2224_v31, %v1154_v33  ;;  %v1128_v37 = vadd.f32 %v2223_v32, %v1127_v34  ;;  %v2124_v34 = vld [vmem:[%s3195_s3 + $0x2f8] sm:$0xff] }
 0xcfa   : > { %2072 = vmatpush.xpose.msk.msra.mxu2 %vm440_vm5, %v1155_v35  ;;  %v1268_v6 = vpop.f32.mrf.mxu0  ;;  %v2123_v35 = vld [vmem:[%s3195_s3 + $0x2f0] sm:$0xff] }
 0xcfb   : > { %v1269_v9 = vadd.f32 %v2225_v4, %v1268_v6 }
 0xcfd   : > { %2073 = vmatmul.msk.f32.vlgmr.msra.gmra.mxu2 %vm440_vm5, %v1128_v37  ;;  %v2122_v37 = vld [vmem:[%s3195_s3 + $0x2e8] sm:$0xff] }
 0xcfe   : > { %1317 = vmatpush.msrb.mxu2 %v2088_v36  ;;  %v2226_v36 = vld [vmem:[%s3194_s2 + $0x17] ss:$0 sm:$0xff] }
 0xd00   : > { %1318 = vmatpush.msrb.mxu2 %v2087_v38  ;;  %v1409_v38 = vpop.f32.mrf.mxu1 }
 0xd02   : > { %1319 = vmatpush.msrb.mxu2 %v2086_v39  ;;  %v2121_v39 = vld [vmem:[%s3195_s3 + $0x2e0] sm:$0xff] }
 0xd04   : > { %1320 = vmatpush.msrb.mxu2 %v2085_v40  ;;  %v1410_v40 = vadd.f32 %v2226_v36, %v1409_v38 }
 0xd05   : > { %2089 = vmatmul.msk.f32.vlgmr.msrb.gmra.mxu2 %vm320_vm0, %v2880_v24 }
 0xd06   : > { %1431 = vmatpush.msra.mxu2 %v2101_v41 }
 0xd08   : > { %1432 = vmatpush.msra.mxu2 %v2100_v42 }
 0xd0a   : > { %1433 = vmatpush.msra.mxu2 %v2099_v43 }
 0xd0c   : > { %1434 = vmatpush.msra.mxu2 %v2098_v44 }
 0xd0d   : > { %2102 = vmatmul.msk.f32.vlgmr.msra.gmra.mxu2 %vm320_vm0, %v2880_v24 }
 0xd0e   : > { %1545 = vmatpush.msrb.mxu2 %v2114_v45  ;;  %v2232_v45 = vld [vmem:[%s3194_s2 + $0x20] ss:$0 sm:$0xff] }
 0xd10   : > { %1546 = vmatpush.msrb.mxu2 %v2113_v47 }
 0xd12   : > { %1547 = vmatpush.msrb.mxu2 %v2112_v48 }
 0xd14   : > { %1548 = vmatpush.msrb.mxu2 %v2111_v49 }
 0xd15   : > { %2115 = vmatmul.msk.f32.vlgmr.msrb.gmra.mxu2 %vm320_vm0, %v2880_v24 }
 0xd80   : > { %v1207_v50 = vpop.f32.mrf.mxu2 }
 0xd81   : > { %v1208_v51 = vadd.f32 %v1207_v50, %v2631_v23 }
 0xd83   : > { %v1210_v53 = vsel %vm440_vm5, %v1208_v51, -inf }
 0xd84   : > { %1211 = vmax.xlane.f32.xlu1 %v1210_v53 }
 0xd88   : > { %v1322_v55 = vpop.f32.mrf.mxu2 }
 0xd89   : > { %v1323_v56 = vadd.f32 %v2227_v54, %v1322_v55 }
 0xd8b   : > { %1380 = vmatpush.msra.mxu0 %v1323_v56 }
 0xd90   : > { %v1436_v58 = vpop.f32.mrf.mxu2 }
 0xd91   : > { %v1437_v46 = vadd.f32 %v2228_v57, %v1436_v58  ;;  %v2229_v58 = vld [vmem:[%s3194_s2 + $0x18] ss:$0 sm:$0xff] }
 0xd93   : > { %2108 = vmatpush.xpose.msk.msrb.mxu0 %vm440_vm5, %v1437_v46 }
 0xd98   : > { %v1550_v46 = vpop.f32.mrf.mxu2 }
 0xdf7   : > { %v1212_v59 = vpop.xlane.xlu1 %1211 }
 0xdf8   : > { %v1213_v60 = vsub.f32 %v1208_v51, %v1212_v59  ;;  %v1551_v59 = vadd.f32 %v2229_v58, %v1550_v46  ;;  %v2236_v58 = vld [vmem:[%s3194_s2 + $0x24] ss:$0 sm:$0xff] }
 0xdfa   : > { %v1214_v61 = vmul.f32 1.442695, %v1213_v60 }
 0xdfc   : > { %2266 = vpow2.f32 %v1214_v61 }
 0xe02   : > { %v2267_v62 = vpop.eup %2266 }
 0xe03   : > { %v1216_v52 = vsel %vm440_vm5, %v2267_v62, 0.0 }
 0xe04   : > { %1217 = vadd.xlane.f32.xlu0 %v1216_v52 }
 0xe77   : > { %v1218_v63 = vpop.xlane.xlu0 %1217 }
 0xe78   : > { %2268 = vrcp.f32 %v1218_v63 }
 0xe7e   : > { %v2269_v0 = vpop.eup %2268 }
 0xe7f   : > { %v1220_v1 = vmul.f32 %v2269_v0, %v2267_v62 }
 0xe81   : > { %2074 = vmatmul.msk.f32.vlgmr.msrb.gmra.mxu3 %vm440_vm5, %v1220_v1 }
 0xe82   : > { %1458 = vmatpush.msrb.mxu3 %v2106_v2 }
 0xe84   : > { %1459 = vmatpush.msrb.mxu3 %v2105_v3 }
 0xe86   : > { %1460 = vmatpush.msrb.mxu3 %v2104_v5 }
 0xe88   : > { %1461 = vmatpush.msrb.mxu3 %v2103_v7  ;;  %v2131_v7 = vld [vmem:[%s3196_s4 + $0x30] sm:$0xff] }
 0xe89   : > { %2091 = vmatmul.msk.f32.vlgmr.msra.gmra.mxu3 %vm440_vm5, %v1269_v9  ;;  %v2130_v9 = vld [vmem:[%s3196_s4 + $0x28] sm:$0xff] }
 0xe8a   : > { %1572 = vmatpush.msra.mxu3 %v2119_v10 }
 0xe8c   : > { %1573 = vmatpush.msra.mxu3 %v2118_v11  ;;  %v2129_v11 = vld [vmem:[%s3196_s4 + $0x20] sm:$0xff] }
 0xe8e   : > { %1574 = vmatpush.msra.mxu3 %v2117_v12 }
 0xe90   : > { %1575 = vmatpush.msra.mxu3 %v2116_v13 }
 0xe91   : > { %2107 = vmatmul.msk.f32.vlgmr.msrb.gmra.mxu3 %vm320_vm0, %v2880_v24 }
 0xe99   : > { %2120 = vmatmul.msk.f32.vlgmr.msra.gmra.mxu3 %vm320_vm0, %v2880_v24 }
 0xf04   : > { %v2994_v14 = vpop.f32.mrf.mxu3 }
 0xf0c   : > { %v1348_v15 = vpop.f32.mrf.mxu3 }
 0xf0d   : > { %v1349_v16 = vadd.f32 %v1348_v15, %v2631_v23 }
 0xf0f   : > { %v1351_v17 = vsel %vm440_vm5, %v1349_v16, -inf }
 0xf10   : > { %1352 = vmax.xlane.f32.xlu2 %v1351_v17 }
 0xf14   : > { %v1463_v19 = vpop.f32.mrf.mxu3 }
 0xf15   : > { %v1464_v20 = vadd.f32 %v2230_v18, %v1463_v19  ;;  %v2233_v19 = vld [vmem:[%s3194_s2 + $0x21] ss:$0 sm:$0xff] }
 0xf17   : > { %1521 = vmatpush.msra.mxu1 %v1464_v20 }
 0xf1c   : > { %v1577_v22 = vpop.f32.mrf.mxu3 }
 0xf1d   : > { %v1578_v25 = vadd.f32 %v2231_v21, %v1577_v22 }
 0xf1f   : > { %2126 = vmatpush.xpose.msk.msrb.mxu1 %vm440_vm5, %v1578_v25 }
 0xf83   : > { %v1353_v26 = vpop.xlane.xlu2 %1352 }
 0xf84   : > { %v1354_v27 = vsub.f32 %v1349_v16, %v1353_v26 }
 0xf86   : > { %v1355_v28 = vmul.f32 1.442695, %v1354_v27 }
 0xf88   : > { %2270 = vpow2.f32 %v1355_v28 }
 0xf8e   : > { %v2271_v29 = vpop.eup %2270 }
 0xf8f   : > { %v1357_v30 = vsel %vm440_vm5, %v2271_v29, 0.0 }
 0xf90   : > { %1358 = vadd.xlane.f32.xlu1 %v1357_v30  ;;  %v2137_v30 = vld [vmem:[%s3197_s5 + $0x38] sm:$0xff] }
0x1003   : > { %v1359_v31 = vpop.xlane.xlu1 %1358 }
0x1004   : > { %2272 = vrcp.f32 %v1359_v31  ;;  %v2135_v31 = vld [vmem:[%s3197_s5 + $0x28] sm:$0xff] }
0x100a   : > { %v2273_v32 = vpop.eup %2272 }
0x100b   : > { %v1361_v33 = vmul.f32 %v2273_v32, %v2271_v29  ;;  %v2134_v32 = vld [vmem:[%s3197_s5 + $0x20] sm:$0xff] }
0x100d   : > { %2092 = vmatmul.msk.f32.vlgmr.msra.gmra.mxu0 %vm440_vm5, %v1361_v33 }
0x100e   : > { %1599 = vmatpush.msra.mxu0 %v2124_v34 }
0x1010   : > { %1600 = vmatpush.msra.mxu0 %v2123_v35 }
0x1012   : > { %1601 = vmatpush.msra.mxu0 %v2122_v37 }
0x1014   : > { %1602 = vmatpush.msra.mxu0 %v2121_v39 }
0x1015   : > { %2109 = vmatmul.msk.f32.vlgmr.msrb.gmra.mxu0 %vm440_vm5, %v1410_v40 }
0x1016   : > { %1763 = vmatpush.msrb.mxu0 %v2137_v30 }
0x101d   : > { %2125 = vmatmul.msk.f32.vlgmr.msra.gmra.mxu0 %vm320_vm0, %v2880_v24 }
0x108a   : > { %v1382_v41 = vpop.f32.mrf.mxu0 }
0x1092   : > { %v1489_v42 = vpop.f32.mrf.mxu0 }
0x1093   : > { %v1490_v43 = vadd.f32 %v1489_v42, %v2631_v23  ;;  %v2234_v42 = vld [vmem:[%s3194_s2 + $0x22] ss:$0 sm:$0xff] }
0x1095   : > { %v1492_v44 = vsel %vm440_vm5, %v1490_v43, -inf }
0x1096   : > { %1493 = vmax.xlane.f32.xlu0 %v1492_v44 }
0x109a   : > { %v1604_v47 = vpop.f32.mrf.mxu0 }
0x109b   : > { %v1605_v48 = vadd.f32 %v2232_v45, %v1604_v47  ;;  %v2235_v45 = vld [vmem:[%s3194_s2 + $0x23] ss:$0 sm:$0xff] }
0x109d   : > { %1662 = vmatpush.msra.mxu2 %v1605_v48 }
0x1109   : > { %v1494_v49 = vpop.xlane.xlu0 %1493 }
0x110a   : > { %v1495_v50 = vsub.f32 %v1490_v43, %v1494_v49  ;;  %v2146_v49 = vld [vmem:[%s3198_s6 + $0x78] sm:$0xff] }
0x110c   : > { %v1496_v51 = vmul.f32 1.442695, %v1495_v50  ;;  %v2145_v50 = vld [vmem:[%s3198_s6 + $0x70] sm:$0xff] }
0x110e   : > { %2274 = vpow2.f32 %v1496_v51  ;;  %v2144_v51 = vld [vmem:[%s3198_s6 + $0x68] sm:$0xff] }
0x1114   : > { %v2275_v53 = vpop.eup %2274 }
0x1115   : > { %v1498_v54 = vsel %vm440_vm5, %v2275_v53, 0.0 }
0x1116   : > { %1499 = vadd.xlane.f32.xlu2 %v1498_v54  ;;  %v2142_v54 = vld [vmem:[%s3198_s6 + $0x58] sm:$0xff] }
0x112e   : > { %1668 = vrot.lane.b32.xlu2 %v1382_v41, %s2356_s24  ;;  %s2310_s24 = scalar_lea.hbm %s3200_s8, 2 }
0x1189   : > { %v1500_v55 = vpop.xlane.xlu2 %1499 }
0x118a   : > { %2276 = vrcp.f32 %v1500_v55  ;;  %v2141_v55 = vld [vmem:[%s3198_s6 + $0x50] sm:$0xff] }
0x1190   : > { %v2277_v56 = vpop.eup %2276 }
0x1191   : > { %v1502_v57 = vmul.f32 %v2277_v56, %v2275_v53  ;;  %v1669_v12 = vpop.permute.xlu2 %1668  ;;  %v2143_v53 = vld [vmem:[%s3198_s6 + $0x60] sm:$0xff]  ;;  %v2140_v56 = vld [vmem:[%s3198_s6 + $0x48] sm:$0xff] }
0x1192   : > { %v1679_v15 = vsel %vm440_vm5, %v2994_v14, %v1669_v12 }
0x1193   : > { %2110 = vmatmul.msk.f32.vlgmr.msra.gmra.mxu1 %vm440_vm5, %v1502_v57  ;;  %v2139_v57 = vld [vmem:[%s3198_s6 + $0x40] sm:$0xff] }
0x1194   : > { %1802 = vmatpush.msra.mxu1 %v2146_v49 }
0x1196   : > { %1803 = vmatpush.msra.mxu1 %v2145_v50 }
0x1198   : > { %1804 = vmatpush.msra.mxu1 %v2144_v51 }
0x119a   : > { %1805 = vmatpush.msra.mxu1 %v2143_v53 }
0x119b   : > { %2127 = vmatmul.msk.f32.vlgmr.msrb.gmra.mxu1 %vm440_vm5, %v1551_v59 }
0x119c   : > { %1806 = vmatpush.msra.mxu1 %v2142_v54 }
0x119e   : > { %1807 = vmatpush.msra.mxu1 %v2141_v55 }
0x11a0   : > { %1808 = vmatpush.msra.mxu1 %v2140_v56 }
0x11a2   : > { %1809 = vmatpush.msra.mxu1 %v2139_v57 }
0x1210   : > { %v1523_v60 = vpop.f32.mrf.mxu1 }
0x1218   : > { %v1630_v61 = vpop.f32.mrf.mxu1 }
0x1219   : > { %v1631_v62 = vadd.f32 %v1630_v61, %v2631_v23  ;;  %v2132_v23 = vld [vmem:[%s3196_s4 + $0x38] sm:$0xff] }
0x121a   : > { %1704 = vmatpush.msrb.mxu3 %v2132_v23 }
0x121b   : > { %v1633_v52 = vsel %vm440_vm5, %v1631_v62, -inf }
0x121c   : > { %1634 = vmax.xlane.f32.xlu1 %v1633_v52  ;;  %1705 = vmatpush.msrb.mxu3 %v2131_v7 }
0x121e   : > { %1706 = vmatpush.msrb.mxu3 %v2130_v9 }
0x1220   : > { %1707 = vmatpush.msrb.mxu3 %v2129_v11 }
0x1235   : > { %1672 = vrot.lane.b32.xlu1 %v1523_v60, %s2357_s10 }
0x128f   : > { %v1635_v63 = vpop.xlane.xlu1 %1634 }
0x1290   : > { %v1636_v0 = vsub.f32 %v1631_v62, %v1635_v63 }
0x1292   : > { %v1637_v1 = vmul.f32 1.442695, %v1636_v0 }
0x1294   : > { %2278 = vpow2.f32 %v1637_v1 }
0x129a   : > { %v2279_v2 = vpop.eup %2278 }
0x129b   : > { %v1639_v3 = vsel %vm440_vm5, %v2279_v2, 0.0 }
0x129c   : > { %1640 = vadd.xlane.f32.xlu0 %v1639_v3 }
0x12a7   : > { %v1673_v13 = vpop.permute.xlu1 %1672 }
0x12a8   : > { %v1680_v16 = vsel %vm937_vm7, %v1679_v15, %v1673_v13  ;;  %v1846_v15 = vld [vmem:[%s3199_s7 + $0x18] sm:$0xff]  ;;  %vm1902_vm7 = vcmask 40960  }
0x12a9   : > { %1863 = vmatpush.msrb.mxu2 %v1846_v15 }
0x130f   : > { %v1641_v4 = vpop.xlane.xlu0 %1640 }
0x1310   : > { %2280 = vrcp.f32 %v1641_v4  ;;  %v2237_v4 = vld [vmem:[%s3194_s2 + $0x25] ss:$0 sm:$0xff] }
0x1316   : > { %v2281_v5 = vpop.eup %2280 }
0x1317   : > { %v1643_v6 = vmul.f32 %v2281_v5, %v2279_v2 }
0x1319   : > { %2128 = vmatmul.msk.f32.vlgmr.msra.gmra.mxu2 %vm440_vm5, %v1643_v6 }
0x139c   : > { %v1664_v10 = vpop.f32.mrf.mxu2 }
0x139d   : > { %1676 = vrot.lane.b32.xlu0 %v1664_v10, %s2358_s21  ;;  %s2306_s21 = scalar_lea.hbm %s2305_s18, 1 }
0x139e   : > { %p2307_p11 = scmp.ne.s32.totalorder %s2305_s18, %s2306_s21  ;;  %p2312_p1 = scmp.lt.s32.totalorder %s2310_s24, %s2306_s21 }
0x13a0   : > { %p2308_p12 = pnand %p2307_p11, %p2442_p5  ;;  %p2313_p2 = por %p2312_p1, %p2311_p0 }
0x13a2   : > { %p2309_p13 = pneg %p2308_p12 }
0x13a4   : > { %p2314_p3 = pnand %p2313_p2, %p2309_p13 }
0x140f   : > { %v1677_v17 = vpop.permute.xlu0 %1676 }
0x1410   : > { %v1681_v18 = vsel %vm939_vm8, %v1680_v16, %v1677_v17  ;;  %v1845_v16 = vld [vmem:[%s3199_s7 + $0x10] sm:$0xff]  ;;  %v1844_v17 = vld [vmem:[%s3199_s7 + $0x8] sm:$0xff] }
0x1411   : > { %2133 = vmatmul.msk.f32.vlgmr.msrb.gmra.mxu3 %vm320_vm0, %v1681_v18  ;;  %1864 = vmatpush.msrb.mxu2 %v1845_v16  ;;  %v1843_v18 = vld [vmem:[%s3199_s7] sm:$0xff] }
0x1413   : > { %1865 = vmatpush.msrb.mxu2 %v1844_v17 }
0x1415   : > { %1866 = vmatpush.msrb.mxu2 %v1843_v18 }
0x1494   : > { %v1709_v20 = vpop.f32.mrf.mxu3 }
0x1495   : > { %v1710_v21 = vadd.f32 %v2233_v19, %v1709_v20 }
0x1497   : > { %v1712_v22 = vadd.f32 %v1710_v21, %v2880_v24  ;;  %v2136_v24 = vld [vmem:[%s3197_s5 + $0x30] sm:$0xff] }
0x1498   : > { %1764 = vmatpush.msrb.mxu0 %v2136_v24 }
0x1499   : > { %v1715_v25 = vsel %vm320_vm0, %v1712_v22, 0.0 }
0x149a   : > { %1716 = vadd.xlane.f32.xlu2 %v1715_v25  ;;  %1765 = vmatpush.msrb.mxu0 %v2135_v31 }
0x149c   : > { %1766 = vmatpush.msrb.mxu0 %v2134_v32 }
0x150d   : > { %v1717_v26 = vpop.xlane.xlu2 %1716 }
0x150e   : > { %v1718_v14 = vmul.f32 %v1717_v26, %v2461_v8 }
0x1510   : > { %v1719_v27 = vsub.f32 %v1712_v22, %v1718_v14 }
0x1512   : > { %v1720_v28 = vmul.f32 %v1719_v27, %v1719_v27 }
0x1514   : > { %v1721_v29 = vsel %vm320_vm0, %v1720_v28, 0.0 }
0x1515   : > { %1722 = vadd.xlane.f32.xlu0 %v1721_v29  ;;  %v2238_v29 = vld [vmem:[%s3194_s2 + $0x26] ss:$0 sm:$0xff] }
0x1588   : > { %v1723_v33 = vpop.xlane.xlu0 %1722 }
0x1589   : > { %v1724_v34 = vmul.f32 %v1723_v33, %v2461_v8  ;;  %v2152_v33 = vld [vmem:[%s3199_s7 + $0x38] sm:$0xff] }
0x158a   : > { %1892 = vmatpush.msra.mxu3 %v2152_v33 }
0x158b   : > { %v1725_v35 = vadd.f32 1e-12, %v1724_v34  ;;  %v2151_v34 = vld [vmem:[%s3199_s7 + $0x30] sm:$0xff] }
0x158c   : > { %1893 = vmatpush.msra.mxu3 %v2151_v34 }
0x158d   : > { %2282 = vrsqrt.f32 %v1725_v35  ;;  %vm1732_vm2 = vweird.f32 %v1725_v35 }
0x1593   : > { %v2283_v36 = vpop.eup %2282 }
0x1594   : > { %v1727_v37 = vmul.f32 %v2283_v36, %v1725_v35  ;;  %vm1733_vm1 = vweird.f32 %v2283_v36  ;;  %v2150_v35 = vld [vmem:[%s3199_s7 + $0x28] sm:$0xff] }
0x1595   : > { %vm1734_vm3 = vmor %vm1732_vm2, %vm1733_vm1  ;;  %1894 = vmatpush.msra.mxu3 %v2150_v35 }
0x1596   : > { %v1728_v38 = vmul.f32 %v2283_v36, %v1727_v37  ;;  %v1847_v37 = vld [vmem:[%s3194_s2 + $0x28] sm:$0x1] }
0x1598   : > { %v1729_v39 = vmul.f32 0.5, %v1728_v38 }
0x159a   : > { %v1730_v40 = vsub.f32 1.5, %v1729_v39 }
0x159c   : > { %v1731_v41 = vmul.f32 %v2283_v36, %v1730_v40 }
0x159e   : > { %v1735_v43 = vsel %vm1734_vm3, %v2283_v36, %v1731_v41  ;;  %v2149_v36 = vld [vmem:[%s3199_s7 + $0x20] sm:$0xff]  ;;  %v1900_v41 = vld [vmem:[%s3194_s2 + $0x29] sm:$0x1] }
0x159f   : > { %v1736_v44 = vmul.f32 %v1735_v43, %v1719_v27  ;;  %1895 = vmatpush.msra.mxu3 %v2149_v36 }
0x15a1   : > { %v1738_v47 = vmul.f32 %v2234_v42, %v1736_v44 }
0x15a3   : > { %v1740_v48 = vadd.f32 %v2235_v45, %v1738_v47 }
0x15a5   : > { %2138 = vmatmul.msk.f32.vlgmr.msrb.gmra.mxu0 %vm320_vm0, %v1740_v48 }
0x1622   : > { %v1768_v46 = vpop.f32.mrf.mxu0 }
0x1623   : > { %v1769_v59 = vadd.f32 %v2236_v58, %v1768_v46 }
0x1625   : > { %v1771_v60 = vmul.f32 %v1769_v59, %v1769_v59 }
0x1627   : > { %v1772_v61 = vmul.f32 %v1771_v60, %v1769_v59 }
0x1629   : > { %v1773_v62 = vmul.f32 0.044715, %v1772_v61 }
0x162b   : > { %v1774_v52 = vadd.f32 %v1773_v62, %v1769_v59 }
0x162d   : > { %v1775_v63 = vmul.f32 0.7978846, %v1774_v52 }
0x162f   : > { %2284 = vtanh.f32 %v1775_v63 }
0x1635   : > { %v2285_v0 = vpop.eup %2284 }
0x1636   : > { %v1777_v1 = vadd.f32 1.0, %v2285_v0 }
0x1638   : > { %v1778_v2 = vmul.f32 0.5, %v1777_v1 }
0x163a   : > { %v1779_v3 = vmul.f32 %v1778_v2, %v1769_v59 }
0x163c   : > { %2147 = vmatmul.msk.f32.vlgmr.msra.gmra.mxu1 %vm1047_vm12, %v1779_v3 }
0x16b9   : > { %v1811_v5 = vpop.f32.mrf.mxu1 }
0x16ba   : > { %v1812_v6 = vadd.f32 %v2237_v4, %v1811_v5 }
0x16bc   : > { %v1814_v23 = vadd.f32 %v1812_v6, %v1740_v48 }
0x16be   : > { %v1817_v7 = vsel %vm320_vm0, %v1814_v23, 0.0 }
0x16bf   : > { %1818 = vadd.xlane.f32.xlu1 %v1817_v7 }
0x1732   : > { %v1819_v9 = vpop.xlane.xlu1 %1818 }
0x1733   : > { %v1820_v10 = vmul.f32 %v1819_v9, %v2461_v8 }
0x1735   : > { %v1821_v11 = vsub.f32 %v1814_v23, %v1820_v10 }
0x1737   : > { %v1822_v12 = vmul.f32 %v1821_v11, %v1821_v11 }
0x1739   : > { %v1823_v13 = vsel %vm320_vm0, %v1822_v12, 0.0 }
0x173a   : > { %1824 = vadd.xlane.f32.xlu2 %v1823_v13 }
0x17ad   : > { %v1825_v19 = vpop.xlane.xlu2 %1824 }
0x17ae   : > { %v1826_v20 = vmul.f32 %v1825_v19, %v2461_v8  ;;  %v2239_v8 = vld [vmem:[%s3194_s2 + $0x27] ss:$0 sm:$0xff] }
0x17b0   : > { %v1827_v21 = vadd.f32 1e-12, %v1826_v20 }
0x17b2   : > { %2286 = vrsqrt.f32 %v1827_v21  ;;  %vm1834_vm5 = vweird.f32 %v1827_v21 }
0x17b8   : > { %v2287_v22 = vpop.eup %2286 }
0x17b9   : > { %v1829_v25 = vmul.f32 %v2287_v22, %v1827_v21  ;;  %vm1835_vm4 = vweird.f32 %v2287_v22 }
0x17ba   : > { %vm1836_vm6 = vmor %vm1834_vm5, %vm1835_vm4 }
0x17bb   : > { %v1830_v26 = vmul.f32 %v2287_v22, %v1829_v25 }
0x17bd   : > { %v1831_v14 = vmul.f32 0.5, %v1830_v26 }
0x17bf   : > { %v1832_v27 = vsub.f32 1.5, %v1831_v14 }
0x17c1   : > { %v1833_v28 = vmul.f32 %v2287_v22, %v1832_v27 }
0x17c3   : > { %v1837_v30 = vsel %vm1836_vm6, %v2287_v22, %v1833_v28 }
0x17c4   : > { %v1838_v24 = vmul.f32 %v1837_v30, %v1821_v11 }
0x17c6   : > { %v1840_v31 = vmul.f32 %v2238_v29, %v1838_v24 }
0x17c8   : > { %v1842_v32 = vadd.f32 %v2239_v8, %v1840_v31 }
0x17ca   : > { %2148 = vmatmul.msk.f32.vlgmr.msrb.gmra.mxu2 %vm320_vm0, %v1842_v32 }
0x184d   : > { %v1868_v38 = vpop.f32.mrf.mxu2 }
0x184e   : > { %v1869_v39 = vadd.f32 %v1868_v38, %v1847_v37 }
0x1850   : > { %2288 = vtanh.f32 %v1869_v39 }
0x1856   : > { %v2289_v40 = vpop.eup %2288 }
0x1857   : > { %2153 = vmatmul.msk.f32.vlgmr.msra.gmra.mxu3 %vm320_vm0, %v2289_v40 }
0x18da   : > { %v1897_v42 = vpop.f32.mrf.mxu3 }
0x18db   : > { %v1901_v43 = vadd.f32 %v1900_v41, %v1897_v42 }
0x18dd   : > { %1903 = vst.msk [vmem:[%s306_s26] sm:$0x1] %vm1902_vm7, %v1901_v43 }
0x18de   : > { %2317 = shalt.err (!%p2314_p3)
}
0x18df   : > { %2156 = dma.vmem_to_hbm [thread:$0]  (%p2442_p5), %s1916_s12, 16, %s1918_s17, %s1905_s13  }
0x18e0 PF: > { %p2162_p4 = scmp.ge.s32.totalorder %s2352_s30, 2  ;;  %s1929_s20 = sand.u32 1, %s2340_s27  }
0x18e1   : > { %s1930_s10 = scalar_lea.sflag [#allocation3], %s1929_s20 }
0x18e2   : > { %p2159_p7 = pnand %p2162_p4, %p2446_p6 }
0x18e4   : > { %p2160_p8 = pneg %p2159_p7 }
0x18e6   : > { %2335 = dma.done.wait (%p2160_p8), %s1930_s10, 16  }
0x18e7   : > { %2337 = vsyncadd (%p2160_p8), %s1930_s10, 4294967280  ;;  %p18_p9 = scmp.ge.s32.totalorder %s2429_s11, 4   ;;  %s3203_s27 = smov %s2344_s28 }
0x18e8   : > { %s3204_s28 = smov %s2348_s29  ;;  %s3205_s29 = smov %s2440_s14 }
0x18e9   : > { %s3206_s30 = smov %s2429_s11  ;;  %20 = sbr.rel (!%p18_p9) target bundleno = 3 (0x3), region = 117 }
0x18ee   :  { %1935 = vsyncpa [#allocation3], 1 }
0x18ef   :  { %1937 = vsyncpa [#allocation3 + $0x1], 1 }

</bundles_post_ra>
